<compile_context>
chip_gen: v7x
topology: tpu7x:2x2x1
jax: 0.10.0
libtpu: 0.0.40
codegen_flags: <defaults>
</compile_context>

<pallas_src>
import math
import jax
import jax.numpy as jnp
from jax.experimental import pallas as pl
from jax.experimental.pallas import tpu as pltpu


def cosine_beta_schedule(timesteps, s=0.008):
    """Same schedule as DiffusionModel.cosine_beta_schedule (plain-JAX glue)."""
    steps = timesteps + 1
    x = jnp.linspace(0.0, float(timesteps), steps)
    alphas_cumprod = jnp.cos((x / timesteps + s) / (1 + s) * math.pi * 0.5) ** 2
    alphas_cumprod = alphas_cumprod / alphas_cumprod[0]
    betas = 1.0 - alphas_cumprod[1:] / alphas_cumprod[:-1]
    return jnp.clip(betas, 0.0001, 0.9999)


def _round_up(x, m):
    return ((x + m - 1) // m) * m


def _make_kernel(D, K, n_valid, tile_n, chunk):
    """Build the per-block kernel (static shape params captured by closure)."""
    R = 2 * D + 2 + K            # packed rows: disp | noise | ca | cb | feats
    n_chunks = tile_n // chunk

    def kernel(pk_ref, w_ref, out_ref):
        i = pl.program_id(0)
        base = i * tile_n                                   # global lane offset of block

        # Hoisted, pre-lane-broadcast weight slabs (D, chunk); 19 single-vreg
        # loads once per block -- JAX does not CSE broadcasts inside loops.
        wf = [w_ref[kk] for kk in range(K)]                 # feature weights
        wd = [w_ref[K + e] for e in range(D)]               # x_noisy weights
        bias = w_ref[K + D]                                 # bias row

        lane = jax.lax.broadcasted_iota(jnp.int32, (1, chunk), 1)

        def body(c, acc):
            off = pl.multiple_of(c * chunk, chunk)
            col = pk_ref[:, pl.ds(off, chunk)].astype(jnp.float32)   # (R, chunk)

            disp = col[0:D, :]                              # (D, chunk)
            noise = col[D:2 * D, :]                         # (D, chunk)
            ca = col[2 * D:2 * D + 1, :]                    # (1, chunk)
            cb = col[2 * D + 1:2 * D + 2, :]                # (1, chunk)

            # --- q_sample: forward-diffusion noising (slab VPU FMA) ---
            x_noisy = ca * disp + cb * noise                # (D, chunk)

            # --- denoise-model stand-in: linear over [node_feats | x_noisy]
            #     as (D, chunk) slab FMAs; MXU skipped on purpose. ---
            pred = bias
            for kk in range(K):
                pred = pred + wf[kk] * col[2 * D + 2 + kk:2 * D + 3 + kk, :]
            for e in range(D):
                pred = pred + wd[e] * x_noisy[e:e + 1, :]

            # --- fused F.mse_loss partial: sum_d (noise - pred)^2, lane-masked ---
            diff = noise - pred
            sq = jnp.sum(diff * diff, axis=0, keepdims=True)        # (1, chunk), XLU
            valid = (lane + (base + off)) < n_valid
            return acc + jnp.where(valid, sq, 0.0)

        acc = jax.lax.fori_loop(0, n_chunks, body,
                                jnp.zeros((1, chunk), jnp.float32), unroll=True)
        out_ref[...] = acc                                  # one lane-dense (1,128) store / block

    return kernel


def diffusion_train_loss(packed, w_feat, w_disp, b, n_nodes, *, tile_n=None, chunk=128):
    """packed: (2*D+2+K, N) lane-major rows [disp | noise | sqrt(a_cum)_t |
    sqrt(1-a_cum)_t | node feats]; returns the scalar MSE training loss of
    DiffusionModel.forward('train')."""
    R, N_in = packed.shape
    K, D = w_feat.shape
    assert w_disp.shape == (D, D) and R == 2 * D + 2 + K and N_in == n_nodes
    N = n_nodes

    # 1-2 grid steps for small N (2 balanced blocks for v7x's dual TC), bigger
    # tiles amortize the ~0.35us/step fixed cost for large N.
    if tile_n is None:
        tile_n = min(8192, _round_up(max(pl.cdiv(N, 2), 1), chunk))
    assert tile_n % chunk == 0
    n_blocks = pl.cdiv(N, tile_n)
    if n_blocks > 1 and (n_blocks % 2):
        n_blocks += 1                       # even block count -> no v7x TC straggler
    n_pad = n_blocks * tile_n
    if n_pad != N:
        packed = jnp.pad(packed, ((0, 0), (0, n_pad - N)))
    packed = packed.astype(jnp.float32)

    # Weight columns pre-broadcast across the lane axis once in the wrapper
    # (29 KB) so the kernel needs only plain row loads -- no per-step scalar
    # (SMEM) re-reads, no in-kernel lane broadcasts.
    K_tot = K + D + 1
    w_all = jnp.concatenate([w_feat, w_disp, b.reshape(1, D)], axis=0).astype(jnp.float32)
    w_bcast = jnp.broadcast_to(w_all[:, :, None], (K_tot, D, chunk))

    kernel = _make_kernel(D, K, N, tile_n, chunk)
    psums = pl.pallas_call(
        kernel,
        out_shape=jax.ShapeDtypeStruct((1, n_blocks * chunk), jnp.float32),
        grid=(n_blocks,),
        in_specs=[
            pl.BlockSpec((R, tile_n), lambda i: (0, i)),          # one packed DMA / step
            pl.BlockSpec((K_tot, D, chunk), lambda i: (0, 0, 0)),  # resident weight slabs
        ],
        out_specs=pl.BlockSpec((1, chunk), lambda i: (0, i)),
        compiler_params=pltpu.CompilerParams(
            dimension_semantics=("parallel",),     # disjoint per-block outputs
            vmem_limit_bytes=32 * 1024 * 1024,
        ),
    )(packed, w_bcast)

    # n_blocks*128 masked partial sums left; single tiny fused reduce + scale.
    return jnp.sum(psums) * (1.0 / float(N * D))


if __name__ == "__main__":
    key = jax.random.PRNGKey(0)
    B, D, Fx, Te, T = 256, 3, 4, 8, 1000   # graphs, disp dim, node feats, t-emb, timesteps
    N = B * 6                              # the module's stack()/cat-x6 convention
    K = Fx + 3 + Te                        # node-feature rows [x | pos | t_emb]

    keys = jax.random.split(key, 8)
    # Data produced directly in lane-major (rows, N) layout -- no hot-path transposes.
    disp_t = jax.random.normal(keys[0], (D, N), jnp.float32)    # x_start.disp
    xfeat_t = jax.random.normal(keys[1], (Fx, N), jnp.float32)  # x_start.x
    pos_t = jax.random.normal(keys[2], (3, N), jnp.float32)     # x_start.pos
    noise_t = jax.random.normal(keys[3], (D, N), jnp.float32)   # randn_like(disp)
    t = jax.random.randint(keys[4], (B,), 0, T)                 # per-graph timestep

    # --- diffusion schedule constants (DiffusionModel.__init__) ---
    betas = cosine_beta_schedule(T)
    alphas = 1.0 - betas
    alphas_cumprod = jnp.cumprod(alphas)
    sqrt_alphas_cumprod = jnp.sqrt(alphas_cumprod)
    sqrt_one_minus_alphas_cumprod = jnp.sqrt(1.0 - alphas_cumprod)

    # --- extract(...) + cat-x6-reshape, as lane-dense [1, N] rows ---
    ca_row = jnp.repeat(sqrt_alphas_cumprod[t], 6)[None, :]             # (1, N)
    cb_row = jnp.repeat(sqrt_one_minus_alphas_cumprod[t], 6)[None, :]   # (1, N)

    # sinusoidal time embedding per node (deterministic glue)
    t_node = jnp.repeat(t, 6).astype(jnp.float32)[None, :]              # (1, N)
    freqs = jnp.exp(-math.log(10000.0) * jnp.arange(Te // 2) / (Te // 2))
    ang = freqs[:, None] * t_node                                       # (Te//2, N)
    temb_t = jnp.concatenate([jnp.sin(ang), jnp.cos(ang)], axis=0)      # (Te, N)

    feat_t = jnp.concatenate([xfeat_t, pos_t, temb_t], axis=0)          # (K, N)

    # TODO(synk): the real denoise_model is an external GNN passed at __init__;
    # a deterministic linear stand-in (VPU slab-FMA in the kernel) is used.
    w_feat = jax.random.normal(keys[5], (K, D), jnp.float32) * 0.1
    w_disp = jax.random.normal(keys[6], (D, D), jnp.float32) * 0.1
    b = jax.random.normal(keys[7], (1, D), jnp.float32) * 0.1

    # One packed (23, N) stream: disp | noise | ca | cb | feats.
    packed = jnp.concatenate([disp_t, noise_t, ca_row, cb_row, feat_t], axis=0)

    loss = diffusion_train_loss(packed, w_feat, w_disp, b, N)
    loss = jax.block_until_ready(loss)

    # pure-JAX reference of the same forward pass
    x_noisy_t = ca_row * disp_t + cb_row * noise_t
    pred_t = w_feat.T @ feat_t + w_disp.T @ x_noisy_t + b.T
    loss_ref = jnp.mean((noise_t - pred_t) ** 2)
    assert jnp.allclose(loss, loss_ref, atol=1e-5, rtol=1e-4), (loss, loss_ref)

    print("KERNEL_OK")
</pallas_src>

<mosaic_0001>
module attributes {stable_mosaic.version = 11 : i64} {
  func.func @kernel(%arg0: i32, %arg1: memref<23x768xf32, #tpu.memory_space<vmem>>, %arg2: memref<19x3x128xf32, #tpu.memory_space<vmem>>, %arg3: memref<1x128xf32, #tpu.memory_space<vmem>>) attributes {dimension_semantics = [#tpu.dimension_semantics<parallel>], iteration_bounds = array<i64: 2>, scalar_prefetch = 0 : i64, scratch_operands = 0 : i64, tpu.core_type = #tpu.core_type<tc>, window_params = [{transform_indices = @transform_0, window_bounds = array<i64: 23, 768>}, {pipeline_mode = #tpu.pipeline_mode<synchronous>, transform_indices = @transform_1, window_bounds = array<i64: 19, 3, 128>}, {transform_indices = @transform_2, window_bounds = array<i64: 1, 128>}]} {
    %c768_i32 = arith.constant 768 : i32
    %0 = arith.muli %arg0, %c768_i32 : i32
    %c0 = arith.constant 0 : index
    %c0_0 = arith.constant 0 : index
    %c0_1 = arith.constant 0 : index
    %1 = vector.load %arg2[%c0, %c0_0, %c0_1] : memref<19x3x128xf32, #tpu.memory_space<vmem>>, vector<1x3x128xf32>
    %2 = vector.shape_cast %1 : vector<1x3x128xf32> to vector<3x128xf32>
    %c1 = arith.constant 1 : index
    %c0_2 = arith.constant 0 : index
    %c0_3 = arith.constant 0 : index
    %3 = vector.load %arg2[%c1, %c0_2, %c0_3] : memref<19x3x128xf32, #tpu.memory_space<vmem>>, vector<1x3x128xf32>
    %4 = vector.shape_cast %3 : vector<1x3x128xf32> to vector<3x128xf32>
    %c2 = arith.constant 2 : index
    %c0_4 = arith.constant 0 : index
    %c0_5 = arith.constant 0 : index
    %5 = vector.load %arg2[%c2, %c0_4, %c0_5] : memref<19x3x128xf32, #tpu.memory_space<vmem>>, vector<1x3x128xf32>
    %6 = vector.shape_cast %5 : vector<1x3x128xf32> to vector<3x128xf32>
    %c3 = arith.constant 3 : index
    %c0_6 = arith.constant 0 : index
    %c0_7 = arith.constant 0 : index
    %7 = vector.load %arg2[%c3, %c0_6, %c0_7] : memref<19x3x128xf32, #tpu.memory_space<vmem>>, vector<1x3x128xf32>
    %8 = vector.shape_cast %7 : vector<1x3x128xf32> to vector<3x128xf32>
    %c4 = arith.constant 4 : index
    %c0_8 = arith.constant 0 : index
    %c0_9 = arith.constant 0 : index
    %9 = vector.load %arg2[%c4, %c0_8, %c0_9] : memref<19x3x128xf32, #tpu.memory_space<vmem>>, vector<1x3x128xf32>
    %10 = vector.shape_cast %9 : vector<1x3x128xf32> to vector<3x128xf32>
    %c5 = arith.constant 5 : index
    %c0_10 = arith.constant 0 : index
    %c0_11 = arith.constant 0 : index
    %11 = vector.load %arg2[%c5, %c0_10, %c0_11] : memref<19x3x128xf32, #tpu.memory_space<vmem>>, vector<1x3x128xf32>
    %12 = vector.shape_cast %11 : vector<1x3x128xf32> to vector<3x128xf32>
    %c6 = arith.constant 6 : index
    %c0_12 = arith.constant 0 : index
    %c0_13 = arith.constant 0 : index
    %13 = vector.load %arg2[%c6, %c0_12, %c0_13] : memref<19x3x128xf32, #tpu.memory_space<vmem>>, vector<1x3x128xf32>
    %14 = vector.shape_cast %13 : vector<1x3x128xf32> to vector<3x128xf32>
    %c7 = arith.constant 7 : index
    %c0_14 = arith.constant 0 : index
    %c0_15 = arith.constant 0 : index
    %15 = vector.load %arg2[%c7, %c0_14, %c0_15] : memref<19x3x128xf32, #tpu.memory_space<vmem>>, vector<1x3x128xf32>
    %16 = vector.shape_cast %15 : vector<1x3x128xf32> to vector<3x128xf32>
    %c8 = arith.constant 8 : index
    %c0_16 = arith.constant 0 : index
    %c0_17 = arith.constant 0 : index
    %17 = vector.load %arg2[%c8, %c0_16, %c0_17] : memref<19x3x128xf32, #tpu.memory_space<vmem>>, vector<1x3x128xf32>
    %18 = vector.shape_cast %17 : vector<1x3x128xf32> to vector<3x128xf32>
    %c9 = arith.constant 9 : index
    %c0_18 = arith.constant 0 : index
    %c0_19 = arith.constant 0 : index
    %19 = vector.load %arg2[%c9, %c0_18, %c0_19] : memref<19x3x128xf32, #tpu.memory_space<vmem>>, vector<1x3x128xf32>
    %20 = vector.shape_cast %19 : vector<1x3x128xf32> to vector<3x128xf32>
    %c10 = arith.constant 10 : index
    %c0_20 = arith.constant 0 : index
    %c0_21 = arith.constant 0 : index
    %21 = vector.load %arg2[%c10, %c0_20, %c0_21] : memref<19x3x128xf32, #tpu.memory_space<vmem>>, vector<1x3x128xf32>
    %22 = vector.shape_cast %21 : vector<1x3x128xf32> to vector<3x128xf32>
    %c11 = arith.constant 11 : index
    %c0_22 = arith.constant 0 : index
    %c0_23 = arith.constant 0 : index
    %23 = vector.load %arg2[%c11, %c0_22, %c0_23] : memref<19x3x128xf32, #tpu.memory_space<vmem>>, vector<1x3x128xf32>
    %24 = vector.shape_cast %23 : vector<1x3x128xf32> to vector<3x128xf32>
    %c12 = arith.constant 12 : index
    %c0_24 = arith.constant 0 : index
    %c0_25 = arith.constant 0 : index
    %25 = vector.load %arg2[%c12, %c0_24, %c0_25] : memref<19x3x128xf32, #tpu.memory_space<vmem>>, vector<1x3x128xf32>
    %26 = vector.shape_cast %25 : vector<1x3x128xf32> to vector<3x128xf32>
    %c13 = arith.constant 13 : index
    %c0_26 = arith.constant 0 : index
    %c0_27 = arith.constant 0 : index
    %27 = vector.load %arg2[%c13, %c0_26, %c0_27] : memref<19x3x128xf32, #tpu.memory_space<vmem>>, vector<1x3x128xf32>
    %28 = vector.shape_cast %27 : vector<1x3x128xf32> to vector<3x128xf32>
    %c14 = arith.constant 14 : index
    %c0_28 = arith.constant 0 : index
    %c0_29 = arith.constant 0 : index
    %29 = vector.load %arg2[%c14, %c0_28, %c0_29] : memref<19x3x128xf32, #tpu.memory_space<vmem>>, vector<1x3x128xf32>
    %30 = vector.shape_cast %29 : vector<1x3x128xf32> to vector<3x128xf32>
    %c15 = arith.constant 15 : index
    %c0_30 = arith.constant 0 : index
    %c0_31 = arith.constant 0 : index
    %31 = vector.load %arg2[%c15, %c0_30, %c0_31] : memref<19x3x128xf32, #tpu.memory_space<vmem>>, vector<1x3x128xf32>
    %32 = vector.shape_cast %31 : vector<1x3x128xf32> to vector<3x128xf32>
    %c16 = arith.constant 16 : index
    %c0_32 = arith.constant 0 : index
    %c0_33 = arith.constant 0 : index
    %33 = vector.load %arg2[%c16, %c0_32, %c0_33] : memref<19x3x128xf32, #tpu.memory_space<vmem>>, vector<1x3x128xf32>
    %34 = vector.shape_cast %33 : vector<1x3x128xf32> to vector<3x128xf32>
    %c17 = arith.constant 17 : index
    %c0_34 = arith.constant 0 : index
    %c0_35 = arith.constant 0 : index
    %35 = vector.load %arg2[%c17, %c0_34, %c0_35] : memref<19x3x128xf32, #tpu.memory_space<vmem>>, vector<1x3x128xf32>
    %36 = vector.shape_cast %35 : vector<1x3x128xf32> to vector<3x128xf32>
    %c18 = arith.constant 18 : index
    %c0_36 = arith.constant 0 : index
    %c0_37 = arith.constant 0 : index
    %37 = vector.load %arg2[%c18, %c0_36, %c0_37] : memref<19x3x128xf32, #tpu.memory_space<vmem>>, vector<1x3x128xf32>
    %38 = vector.shape_cast %37 : vector<1x3x128xf32> to vector<3x128xf32>
    %39 = tpu.iota {dimensions = array<i32: 1>} : vector<1x128xi32>
    %cst = arith.constant 0.000000e+00 : f32
    %40 = vector.broadcast %cst : f32 to vector<1x128xf32>
    %c0_i32 = arith.constant 0 : i32
    %c128_i32 = arith.constant 128 : i32
    %41 = arith.muli %c0_i32, %c128_i32 : i32
    %42 = tpu.assume_multiple %41, 128 : i32
    %c0_38 = arith.constant 0 : index
    %43 = arith.index_cast %42 : i32 to index
    %44 = vector.load %arg1[%c0_38, %43] : memref<23x768xf32, #tpu.memory_space<vmem>>, vector<23x128xf32>
    %45 = vector.extract_strided_slice %44 {offsets = [0, 0], sizes = [3, 128], strides = [1, 1]} : vector<23x128xf32> to vector<3x128xf32>
    %46 = vector.extract_strided_slice %44 {offsets = [3, 0], sizes = [3, 128], strides = [1, 1]} : vector<23x128xf32> to vector<3x128xf32>
    %47 = vector.extract_strided_slice %44 {offsets = [6, 0], sizes = [1, 128], strides = [1, 1]} : vector<23x128xf32> to vector<1x128xf32>
    %48 = vector.extract_strided_slice %44 {offsets = [7, 0], sizes = [1, 128], strides = [1, 1]} : vector<23x128xf32> to vector<1x128xf32>
    %49 = vector.broadcast %47 : vector<1x128xf32> to vector<3x128xf32>
    %50 = arith.mulf %49, %45 : vector<3x128xf32>
    %51 = vector.broadcast %48 : vector<1x128xf32> to vector<3x128xf32>
    %52 = arith.mulf %51, %46 : vector<3x128xf32>
    %53 = arith.addf %50, %52 : vector<3x128xf32>
    %54 = vector.extract_strided_slice %44 {offsets = [8, 0], sizes = [1, 128], strides = [1, 1]} : vector<23x128xf32> to vector<1x128xf32>
    %55 = vector.broadcast %54 : vector<1x128xf32> to vector<3x128xf32>
    %56 = arith.mulf %2, %55 : vector<3x128xf32>
    %57 = arith.addf %38, %56 : vector<3x128xf32>
    %58 = vector.extract_strided_slice %44 {offsets = [9, 0], sizes = [1, 128], strides = [1, 1]} : vector<23x128xf32> to vector<1x128xf32>
    %59 = vector.broadcast %58 : vector<1x128xf32> to vector<3x128xf32>
    %60 = arith.mulf %4, %59 : vector<3x128xf32>
    %61 = arith.addf %57, %60 : vector<3x128xf32>
    %62 = vector.extract_strided_slice %44 {offsets = [10, 0], sizes = [1, 128], strides = [1, 1]} : vector<23x128xf32> to vector<1x128xf32>
    %63 = vector.broadcast %62 : vector<1x128xf32> to vector<3x128xf32>
    %64 = arith.mulf %6, %63 : vector<3x128xf32>
    %65 = arith.addf %61, %64 : vector<3x128xf32>
    %66 = vector.extract_strided_slice %44 {offsets = [11, 0], sizes = [1, 128], strides = [1, 1]} : vector<23x128xf32> to vector<1x128xf32>
    %67 = vector.broadcast %66 : vector<1x128xf32> to vector<3x128xf32>
    %68 = arith.mulf %8, %67 : vector<3x128xf32>
    %69 = arith.addf %65, %68 : vector<3x128xf32>
    %70 = vector.extract_strided_slice %44 {offsets = [12, 0], sizes = [1, 128], strides = [1, 1]} : vector<23x128xf32> to vector<1x128xf32>
    %71 = vector.broadcast %70 : vector<1x128xf32> to vector<3x128xf32>
    %72 = arith.mulf %10, %71 : vector<3x128xf32>
    %73 = arith.addf %69, %72 : vector<3x128xf32>
    %74 = vector.extract_strided_slice %44 {offsets = [13, 0], sizes = [1, 128], strides = [1, 1]} : vector<23x128xf32> to vector<1x128xf32>
    %75 = vector.broadcast %74 : vector<1x128xf32> to vector<3x128xf32>
    %76 = arith.mulf %12, %75 : vector<3x128xf32>
    %77 = arith.addf %73, %76 : vector<3x128xf32>
    %78 = vector.extract_strided_slice %44 {offsets = [14, 0], sizes = [1, 128], strides = [1, 1]} : vector<23x128xf32> to vector<1x128xf32>
    %79 = vector.broadcast %78 : vector<1x128xf32> to vector<3x128xf32>
    %80 = arith.mulf %14, %79 : vector<3x128xf32>
    %81 = arith.addf %77, %80 : vector<3x128xf32>
    %82 = vector.extract_strided_slice %44 {offsets = [15, 0], sizes = [1, 128], strides = [1, 1]} : vector<23x128xf32> to vector<1x128xf32>
    %83 = vector.broadcast %82 : vector<1x128xf32> to vector<3x128xf32>
    %84 = arith.mulf %16, %83 : vector<3x128xf32>
    %85 = arith.addf %81, %84 : vector<3x128xf32>
    %86 = vector.extract_strided_slice %44 {offsets = [16, 0], sizes = [1, 128], strides = [1, 1]} : vector<23x128xf32> to vector<1x128xf32>
    %87 = vector.broadcast %86 : vector<1x128xf32> to vector<3x128xf32>
    %88 = arith.mulf %18, %87 : vector<3x128xf32>
    %89 = arith.addf %85, %88 : vector<3x128xf32>
    %90 = vector.extract_strided_slice %44 {offsets = [17, 0], sizes = [1, 128], strides = [1, 1]} : vector<23x128xf32> to vector<1x128xf32>
    %91 = vector.broadcast %90 : vector<1x128xf32> to vector<3x128xf32>
    %92 = arith.mulf %20, %91 : vector<3x128xf32>
    %93 = arith.addf %89, %92 : vector<3x128xf32>
    %94 = vector.extract_strided_slice %44 {offsets = [18, 0], sizes = [1, 128], strides = [1, 1]} : vector<23x128xf32> to vector<1x128xf32>
    %95 = vector.broadcast %94 : vector<1x128xf32> to vector<3x128xf32>
    %96 = arith.mulf %22, %95 : vector<3x128xf32>
    %97 = arith.addf %93, %96 : vector<3x128xf32>
    %98 = vector.extract_strided_slice %44 {offsets = [19, 0], sizes = [1, 128], strides = [1, 1]} : vector<23x128xf32> to vector<1x128xf32>
    %99 = vector.broadcast %98 : vector<1x128xf32> to vector<3x128xf32>
    %100 = arith.mulf %24, %99 : vector<3x128xf32>
    %101 = arith.addf %97, %100 : vector<3x128xf32>
    %102 = vector.extract_strided_slice %44 {offsets = [20, 0], sizes = [1, 128], strides = [1, 1]} : vector<23x128xf32> to vector<1x128xf32>
    %103 = vector.broadcast %102 : vector<1x128xf32> to vector<3x128xf32>
    %104 = arith.mulf %26, %103 : vector<3x128xf32>
    %105 = arith.addf %101, %104 : vector<3x128xf32>
    %106 = vector.extract_strided_slice %44 {offsets = [21, 0], sizes = [1, 128], strides = [1, 1]} : vector<23x128xf32> to vector<1x128xf32>
    %107 = vector.broadcast %106 : vector<1x128xf32> to vector<3x128xf32>
    %108 = arith.mulf %28, %107 : vector<3x128xf32>
    %109 = arith.addf %105, %108 : vector<3x128xf32>
    %110 = vector.extract_strided_slice %44 {offsets = [22, 0], sizes = [1, 128], strides = [1, 1]} : vector<23x128xf32> to vector<1x128xf32>
    %111 = vector.broadcast %110 : vector<1x128xf32> to vector<3x128xf32>
    %112 = arith.mulf %30, %111 : vector<3x128xf32>
    %113 = arith.addf %109, %112 : vector<3x128xf32>
    %114 = vector.extract_strided_slice %53 {offsets = [0, 0], sizes = [1, 128], strides = [1, 1]} : vector<3x128xf32> to vector<1x128xf32>
    %115 = vector.broadcast %114 : vector<1x128xf32> to vector<3x128xf32>
    %116 = arith.mulf %32, %115 : vector<3x128xf32>
    %117 = arith.addf %113, %116 : vector<3x128xf32>
    %118 = vector.extract_strided_slice %53 {offsets = [1, 0], sizes = [1, 128], strides = [1, 1]} : vector<3x128xf32> to vector<1x128xf32>
    %119 = vector.broadcast %118 : vector<1x128xf32> to vector<3x128xf32>
    %120 = arith.mulf %34, %119 : vector<3x128xf32>
    %121 = arith.addf %117, %120 : vector<3x128xf32>
    %122 = vector.extract_strided_slice %53 {offsets = [2, 0], sizes = [1, 128], strides = [1, 1]} : vector<3x128xf32> to vector<1x128xf32>
    %123 = vector.broadcast %122 : vector<1x128xf32> to vector<3x128xf32>
    %124 = arith.mulf %36, %123 : vector<3x128xf32>
    %125 = arith.addf %121, %124 : vector<3x128xf32>
    %126 = arith.subf %46, %125 : vector<3x128xf32>
    %127 = arith.mulf %126, %126 : vector<3x128xf32>
    %cst_39 = arith.constant dense<0.000000e+00> : vector<128xf32>
    %128 = vector.multi_reduction <add>, %127, %cst_39 [0] : vector<3x128xf32> to vector<128xf32>
    %129 = vector.shape_cast %128 : vector<128xf32> to vector<1x128xf32>
    %130 = arith.addi %0, %42 : i32
    %131 = vector.broadcast %130 : i32 to vector<1x128xi32>
    %132 = arith.addi %39, %131 : vector<1x128xi32>
    %c1536_i32 = arith.constant 1536 : i32
    %133 = vector.broadcast %c1536_i32 : i32 to vector<1x128xi32>
    %134 = arith.cmpi slt, %132, %133 : vector<1x128xi32>
    %cst_40 = arith.constant 0.000000e+00 : f32
    %135 = vector.broadcast %cst_40 : f32 to vector<1x128xf32>
    %136 = arith.select %134, %129, %135 : vector<1x128xi1>, vector<1x128xf32>
    %137 = arith.addf %40, %136 : vector<1x128xf32>
    %c1_i32 = arith.constant 1 : i32
    %c128_i32_41 = arith.constant 128 : i32
    %138 = arith.muli %c1_i32, %c128_i32_41 : i32
    %139 = tpu.assume_multiple %138, 128 : i32
    %c0_42 = arith.constant 0 : index
    %140 = arith.index_cast %139 : i32 to index
    %141 = vector.load %arg1[%c0_42, %140] : memref<23x768xf32, #tpu.memory_space<vmem>>, vector<23x128xf32>
    %142 = vector.extract_strided_slice %141 {offsets = [0, 0], sizes = [3, 128], strides = [1, 1]} : vector<23x128xf32> to vector<3x128xf32>
    %143 = vector.extract_strided_slice %141 {offsets = [3, 0], sizes = [3, 128], strides = [1, 1]} : vector<23x128xf32> to vector<3x128xf32>
    %144 = vector.extract_strided_slice %141 {offsets = [6, 0], sizes = [1, 128], strides = [1, 1]} : vector<23x128xf32> to vector<1x128xf32>
    %145 = vector.extract_strided_slice %141 {offsets = [7, 0], sizes = [1, 128], strides = [1, 1]} : vector<23x128xf32> to vector<1x128xf32>
    %146 = vector.broadcast %144 : vector<1x128xf32> to vector<3x128xf32>
    %147 = arith.mulf %146, %142 : vector<3x128xf32>
    %148 = vector.broadcast %145 : vector<1x128xf32> to vector<3x128xf32>
    %149 = arith.mulf %148, %143 : vector<3x128xf32>
    %150 = arith.addf %147, %149 : vector<3x128xf32>
    %151 = vector.extract_strided_slice %141 {offsets = [8, 0], sizes = [1, 128], strides = [1, 1]} : vector<23x128xf32> to vector<1x128xf32>
    %152 = vector.broadcast %151 : vector<1x128xf32> to vector<3x128xf32>
    %153 = arith.mulf %2, %152 : vector<3x128xf32>
    %154 = arith.addf %38, %153 : vector<3x128xf32>
    %155 = vector.extract_strided_slice %141 {offsets = [9, 0], sizes = [1, 128], strides = [1, 1]} : vector<23x128xf32> to vector<1x128xf32>
    %156 = vector.broadcast %155 : vector<1x128xf32> to vector<3x128xf32>
    %157 = arith.mulf %4, %156 : vector<3x128xf32>
    %158 = arith.addf %154, %157 : vector<3x128xf32>
    %159 = vector.extract_strided_slice %141 {offsets = [10, 0], sizes = [1, 128], strides = [1, 1]} : vector<23x128xf32> to vector<1x128xf32>
    %160 = vector.broadcast %159 : vector<1x128xf32> to vector<3x128xf32>
    %161 = arith.mulf %6, %160 : vector<3x128xf32>
    %162 = arith.addf %158, %161 : vector<3x128xf32>
    %163 = vector.extract_strided_slice %141 {offsets = [11, 0], sizes = [1, 128], strides = [1, 1]} : vector<23x128xf32> to vector<1x128xf32>
    %164 = vector.broadcast %163 : vector<1x128xf32> to vector<3x128xf32>
    %165 = arith.mulf %8, %164 : vector<3x128xf32>
    %166 = arith.addf %162, %165 : vector<3x128xf32>
    %167 = vector.extract_strided_slice %141 {offsets = [12, 0], sizes = [1, 128], strides = [1, 1]} : vector<23x128xf32> to vector<1x128xf32>
    %168 = vector.broadcast %167 : vector<1x128xf32> to vector<3x128xf32>
    %169 = arith.mulf %10, %168 : vector<3x128xf32>
    %170 = arith.addf %166, %169 : vector<3x128xf32>
    %171 = vector.extract_strided_slice %141 {offsets = [13, 0], sizes = [1, 128], strides = [1, 1]} : vector<23x128xf32> to vector<1x128xf32>
    %172 = vector.broadcast %171 : vector<1x128xf32> to vector<3x128xf32>
    %173 = arith.mulf %12, %172 : vector<3x128xf32>
    %174 = arith.addf %170, %173 : vector<3x128xf32>
    %175 = vector.extract_strided_slice %141 {offsets = [14, 0], sizes = [1, 128], strides = [1, 1]} : vector<23x128xf32> to vector<1x128xf32>
    %176 = vector.broadcast %175 : vector<1x128xf32> to vector<3x128xf32>
    %177 = arith.mulf %14, %176 : vector<3x128xf32>
    %178 = arith.addf %174, %177 : vector<3x128xf32>
    %179 = vector.extract_strided_slice %141 {offsets = [15, 0], sizes = [1, 128], strides = [1, 1]} : vector<23x128xf32> to vector<1x128xf32>
    %180 = vector.broadcast %179 : vector<1x128xf32> to vector<3x128xf32>
    %181 = arith.mulf %16, %180 : vector<3x128xf32>
    %182 = arith.addf %178, %181 : vector<3x128xf32>
    %183 = vector.extract_strided_slice %141 {offsets = [16, 0], sizes = [1, 128], strides = [1, 1]} : vector<23x128xf32> to vector<1x128xf32>
    %184 = vector.broadcast %183 : vector<1x128xf32> to vector<3x128xf32>
    %185 = arith.mulf %18, %184 : vector<3x128xf32>
    %186 = arith.addf %182, %185 : vector<3x128xf32>
    %187 = vector.extract_strided_slice %141 {offsets = [17, 0], sizes = [1, 128], strides = [1, 1]} : vector<23x128xf32> to vector<1x128xf32>
    %188 = vector.broadcast %187 : vector<1x128xf32> to vector<3x128xf32>
    %189 = arith.mulf %20, %188 : vector<3x128xf32>
    %190 = arith.addf %186, %189 : vector<3x128xf32>
    %191 = vector.extract_strided_slice %141 {offsets = [18, 0], sizes = [1, 128], strides = [1, 1]} : vector<23x128xf32> to vector<1x128xf32>
    %192 = vector.broadcast %191 : vector<1x128xf32> to vector<3x128xf32>
    %193 = arith.mulf %22, %192 : vector<3x128xf32>
    %194 = arith.addf %190, %193 : vector<3x128xf32>
    %195 = vector.extract_strided_slice %141 {offsets = [19, 0], sizes = [1, 128], strides = [1, 1]} : vector<23x128xf32> to vector<1x128xf32>
    %196 = vector.broadcast %195 : vector<1x128xf32> to vector<3x128xf32>
    %197 = arith.mulf %24, %196 : vector<3x128xf32>
    %198 = arith.addf %194, %197 : vector<3x128xf32>
    %199 = vector.extract_strided_slice %141 {offsets = [20, 0], sizes = [1, 128], strides = [1, 1]} : vector<23x128xf32> to vector<1x128xf32>
    %200 = vector.broadcast %199 : vector<1x128xf32> to vector<3x128xf32>
    %201 = arith.mulf %26, %200 : vector<3x128xf32>
    %202 = arith.addf %198, %201 : vector<3x128xf32>
    %203 = vector.extract_strided_slice %141 {offsets = [21, 0], sizes = [1, 128], strides = [1, 1]} : vector<23x128xf32> to vector<1x128xf32>
    %204 = vector.broadcast %203 : vector<1x128xf32> to vector<3x128xf32>
    %205 = arith.mulf %28, %204 : vector<3x128xf32>
    %206 = arith.addf %202, %205 : vector<3x128xf32>
    %207 = vector.extract_strided_slice %141 {offsets = [22, 0], sizes = [1, 128], strides = [1, 1]} : vector<23x128xf32> to vector<1x128xf32>
    %208 = vector.broadcast %207 : vector<1x128xf32> to vector<3x128xf32>
    %209 = arith.mulf %30, %208 : vector<3x128xf32>
    %210 = arith.addf %206, %209 : vector<3x128xf32>
    %211 = vector.extract_strided_slice %150 {offsets = [0, 0], sizes = [1, 128], strides = [1, 1]} : vector<3x128xf32> to vector<1x128xf32>
    %212 = vector.broadcast %211 : vector<1x128xf32> to vector<3x128xf32>
    %213 = arith.mulf %32, %212 : vector<3x128xf32>
    %214 = arith.addf %210, %213 : vector<3x128xf32>
    %215 = vector.extract_strided_slice %150 {offsets = [1, 0], sizes = [1, 128], strides = [1, 1]} : vector<3x128xf32> to vector<1x128xf32>
    %216 = vector.broadcast %215 : vector<1x128xf32> to vector<3x128xf32>
    %217 = arith.mulf %34, %216 : vector<3x128xf32>
    %218 = arith.addf %214, %217 : vector<3x128xf32>
    %219 = vector.extract_strided_slice %150 {offsets = [2, 0], sizes = [1, 128], strides = [1, 1]} : vector<3x128xf32> to vector<1x128xf32>
    %220 = vector.broadcast %219 : vector<1x128xf32> to vector<3x128xf32>
    %221 = arith.mulf %36, %220 : vector<3x128xf32>
    %222 = arith.addf %218, %221 : vector<3x128xf32>
    %223 = arith.subf %143, %222 : vector<3x128xf32>
    %224 = arith.mulf %223, %223 : vector<3x128xf32>
    %cst_43 = arith.constant dense<0.000000e+00> : vector<128xf32>
    %225 = vector.multi_reduction <add>, %224, %cst_43 [0] : vector<3x128xf32> to vector<128xf32>
    %226 = vector.shape_cast %225 : vector<128xf32> to vector<1x128xf32>
    %227 = arith.addi %0, %139 : i32
    %228 = vector.broadcast %227 : i32 to vector<1x128xi32>
    %229 = arith.addi %39, %228 : vector<1x128xi32>
    %c1536_i32_44 = arith.constant 1536 : i32
    %230 = vector.broadcast %c1536_i32_44 : i32 to vector<1x128xi32>
    %231 = arith.cmpi slt, %229, %230 : vector<1x128xi32>
    %cst_45 = arith.constant 0.000000e+00 : f32
    %232 = vector.broadcast %cst_45 : f32 to vector<1x128xf32>
    %233 = arith.select %231, %226, %232 : vector<1x128xi1>, vector<1x128xf32>
    %234 = arith.addf %137, %233 : vector<1x128xf32>
    %c2_i32 = arith.constant 2 : i32
    %c128_i32_46 = arith.constant 128 : i32
    %235 = arith.muli %c2_i32, %c128_i32_46 : i32
    %236 = tpu.assume_multiple %235, 128 : i32
    %c0_47 = arith.constant 0 : index
    %237 = arith.index_cast %236 : i32 to index
    %238 = vector.load %arg1[%c0_47, %237] : memref<23x768xf32, #tpu.memory_space<vmem>>, vector<23x128xf32>
    %239 = vector.extract_strided_slice %238 {offsets = [0, 0], sizes = [3, 128], strides = [1, 1]} : vector<23x128xf32> to vector<3x128xf32>
    %240 = vector.extract_strided_slice %238 {offsets = [3, 0], sizes = [3, 128], strides = [1, 1]} : vector<23x128xf32> to vector<3x128xf32>
    %241 = vector.extract_strided_slice %238 {offsets = [6, 0], sizes = [1, 128], strides = [1, 1]} : vector<23x128xf32> to vector<1x128xf32>
    %242 = vector.extract_strided_slice %238 {offsets = [7, 0], sizes = [1, 128], strides = [1, 1]} : vector<23x128xf32> to vector<1x128xf32>
    %243 = vector.broadcast %241 : vector<1x128xf32> to vector<3x128xf32>
    %244 = arith.mulf %243, %239 : vector<3x128xf32>
    %245 = vector.broadcast %242 : vector<1x128xf32> to vector<3x128xf32>
    %246 = arith.mulf %245, %240 : vector<3x128xf32>
    %247 = arith.addf %244, %246 : vector<3x128xf32>
    %248 = vector.extract_strided_slice %238 {offsets = [8, 0], sizes = [1, 128], strides = [1, 1]} : vector<23x128xf32> to vector<1x128xf32>
    %249 = vector.broadcast %248 : vector<1x128xf32> to vector<3x128xf32>
    %250 = arith.mulf %2, %249 : vector<3x128xf32>
    %251 = arith.addf %38, %250 : vector<3x128xf32>
    %252 = vector.extract_strided_slice %238 {offsets = [9, 0], sizes = [1, 128], strides = [1, 1]} : vector<23x128xf32> to vector<1x128xf32>
    %253 = vector.broadcast %252 : vector<1x128xf32> to vector<3x128xf32>
    %254 = arith.mulf %4, %253 : vector<3x128xf32>
    %255 = arith.addf %251, %254 : vector<3x128xf32>
    %256 = vector.extract_strided_slice %238 {offsets = [10, 0], sizes = [1, 128], strides = [1, 1]} : vector<23x128xf32> to vector<1x128xf32>
    %257 = vector.broadcast %256 : vector<1x128xf32> to vector<3x128xf32>
    %258 = arith.mulf %6, %257 : vector<3x128xf32>
    %259 = arith.addf %255, %258 : vector<3x128xf32>
    %260 = vector.extract_strided_slice %238 {offsets = [11, 0], sizes = [1, 128], strides = [1, 1]} : vector<23x128xf32> to vector<1x128xf32>
    %261 = vector.broadcast %260 : vector<1x128xf32> to vector<3x128xf32>
    %262 = arith.mulf %8, %261 : vector<3x128xf32>
    %263 = arith.addf %259, %262 : vector<3x128xf32>
    %264 = vector.extract_strided_slice %238 {offsets = [12, 0], sizes = [1, 128], strides = [1, 1]} : vector<23x128xf32> to vector<1x128xf32>
    %265 = vector.broadcast %264 : vector<1x128xf32> to vector<3x128xf32>
    %266 = arith.mulf %10, %265 : vector<3x128xf32>
    %267 = arith.addf %263, %266 : vector<3x128xf32>
    %268 = vector.extract_strided_slice %238 {offsets = [13, 0], sizes = [1, 128], strides = [1, 1]} : vector<23x128xf32> to vector<1x128xf32>
    %269 = vector.broadcast %268 : vector<1x128xf32> to vector<3x128xf32>
    %270 = arith.mulf %12, %269 : vector<3x128xf32>
    %271 = arith.addf %267, %270 : vector<3x128xf32>
    %272 = vector.extract_strided_slice %238 {offsets = [14, 0], sizes = [1, 128], strides = [1, 1]} : vector<23x128xf32> to vector<1x128xf32>
    %273 = vector.broadcast %272 : vector<1x128xf32> to vector<3x128xf32>
    %274 = arith.mulf %14, %273 : vector<3x128xf32>
    %275 = arith.addf %271, %274 : vector<3x128xf32>
    %276 = vector.extract_strided_slice %238 {offsets = [15, 0], sizes = [1, 128], strides = [1, 1]} : vector<23x128xf32> to vector<1x128xf32>
    %277 = vector.broadcast %276 : vector<1x128xf32> to vector<3x128xf32>
    %278 = arith.mulf %16, %277 : vector<3x128xf32>
    %279 = arith.addf %275, %278 : vector<3x128xf32>
    %280 = vector.extract_strided_slice %238 {offsets = [16, 0], sizes = [1, 128], strides = [1, 1]} : vector<23x128xf32> to vector<1x128xf32>
    %281 = vector.broadcast %280 : vector<1x128xf32> to vector<3x128xf32>
    %282 = arith.mulf %18, %281 : vector<3x128xf32>
    %283 = arith.addf %279, %282 : vector<3x128xf32>
    %284 = vector.extract_strided_slice %238 {offsets = [17, 0], sizes = [1, 128], strides = [1, 1]} : vector<23x128xf32> to vector<1x128xf32>
    %285 = vector.broadcast %284 : vector<1x128xf32> to vector<3x128xf32>
    %286 = arith.mulf %20, %285 : vector<3x128xf32>
    %287 = arith.addf %283, %286 : vector<3x128xf32>
    %288 = vector.extract_strided_slice %238 {offsets = [18, 0], sizes = [1, 128], strides = [1, 1]} : vector<23x128xf32> to vector<1x128xf32>
    %289 = vector.broadcast %288 : vector<1x128xf32> to vector<3x128xf32>
    %290 = arith.mulf %22, %289 : vector<3x128xf32>
    %291 = arith.addf %287, %290 : vector<3x128xf32>
    %292 = vector.extract_strided_slice %238 {offsets = [19, 0], sizes = [1, 128], strides = [1, 1]} : vector<23x128xf32> to vector<1x128xf32>
    %293 = vector.broadcast %292 : vector<1x128xf32> to vector<3x128xf32>
    %294 = arith.mulf %24, %293 : vector<3x128xf32>
    %295 = arith.addf %291, %294 : vector<3x128xf32>
    %296 = vector.extract_strided_slice %238 {offsets = [20, 0], sizes = [1, 128], strides = [1, 1]} : vector<23x128xf32> to vector<1x128xf32>
    %297 = vector.broadcast %296 : vector<1x128xf32> to vector<3x128xf32>
    %298 = arith.mulf %26, %297 : vector<3x128xf32>
    %299 = arith.addf %295, %298 : vector<3x128xf32>
    %300 = vector.extract_strided_slice %238 {offsets = [21, 0], sizes = [1, 128], strides = [1, 1]} : vector<23x128xf32> to vector<1x128xf32>
    %301 = vector.broadcast %300 : vector<1x128xf32> to vector<3x128xf32>
    %302 = arith.mulf %28, %301 : vector<3x128xf32>
    %303 = arith.addf %299, %302 : vector<3x128xf32>
    %304 = vector.extract_strided_slice %238 {offsets = [22, 0], sizes = [1, 128], strides = [1, 1]} : vector<23x128xf32> to vector<1x128xf32>
    %305 = vector.broadcast %304 : vector<1x128xf32> to vector<3x128xf32>
    %306 = arith.mulf %30, %305 : vector<3x128xf32>
    %307 = arith.addf %303, %306 : vector<3x128xf32>
    %308 = vector.extract_strided_slice %247 {offsets = [0, 0], sizes = [1, 128], strides = [1, 1]} : vector<3x128xf32> to vector<1x128xf32>
    %309 = vector.broadcast %308 : vector<1x128xf32> to vector<3x128xf32>
    %310 = arith.mulf %32, %309 : vector<3x128xf32>
    %311 = arith.addf %307, %310 : vector<3x128xf32>
    %312 = vector.extract_strided_slice %247 {offsets = [1, 0], sizes = [1, 128], strides = [1, 1]} : vector<3x128xf32> to vector<1x128xf32>
    %313 = vector.broadcast %312 : vector<1x128xf32> to vector<3x128xf32>
    %314 = arith.mulf %34, %313 : vector<3x128xf32>
    %315 = arith.addf %311, %314 : vector<3x128xf32>
    %316 = vector.extract_strided_slice %247 {offsets = [2, 0], sizes = [1, 128], strides = [1, 1]} : vector<3x128xf32> to vector<1x128xf32>
    %317 = vector.broadcast %316 : vector<1x128xf32> to vector<3x128xf32>
    %318 = arith.mulf %36, %317 : vector<3x128xf32>
    %319 = arith.addf %315, %318 : vector<3x128xf32>
    %320 = arith.subf %240, %319 : vector<3x128xf32>
    %321 = arith.mulf %320, %320 : vector<3x128xf32>
    %cst_48 = arith.constant dense<0.000000e+00> : vector<128xf32>
    %322 = vector.multi_reduction <add>, %321, %cst_48 [0] : vector<3x128xf32> to vector<128xf32>
    %323 = vector.shape_cast %322 : vector<128xf32> to vector<1x128xf32>
    %324 = arith.addi %0, %236 : i32
    %325 = vector.broadcast %324 : i32 to vector<1x128xi32>
    %326 = arith.addi %39, %325 : vector<1x128xi32>
    %c1536_i32_49 = arith.constant 1536 : i32
    %327 = vector.broadcast %c1536_i32_49 : i32 to vector<1x128xi32>
    %328 = arith.cmpi slt, %326, %327 : vector<1x128xi32>
    %cst_50 = arith.constant 0.000000e+00 : f32
    %329 = vector.broadcast %cst_50 : f32 to vector<1x128xf32>
    %330 = arith.select %328, %323, %329 : vector<1x128xi1>, vector<1x128xf32>
    %331 = arith.addf %234, %330 : vector<1x128xf32>
    %c3_i32 = arith.constant 3 : i32
    %c128_i32_51 = arith.constant 128 : i32
    %332 = arith.muli %c3_i32, %c128_i32_51 : i32
    %333 = tpu.assume_multiple %332, 128 : i32
    %c0_52 = arith.constant 0 : index
    %334 = arith.index_cast %333 : i32 to index
    %335 = vector.load %arg1[%c0_52, %334] : memref<23x768xf32, #tpu.memory_space<vmem>>, vector<23x128xf32>
    %336 = vector.extract_strided_slice %335 {offsets = [0, 0], sizes = [3, 128], strides = [1, 1]} : vector<23x128xf32> to vector<3x128xf32>
    %337 = vector.extract_strided_slice %335 {offsets = [3, 0], sizes = [3, 128], strides = [1, 1]} : vector<23x128xf32> to vector<3x128xf32>
    %338 = vector.extract_strided_slice %335 {offsets = [6, 0], sizes = [1, 128], strides = [1, 1]} : vector<23x128xf32> to vector<1x128xf32>
    %339 = vector.extract_strided_slice %335 {offsets = [7, 0], sizes = [1, 128], strides = [1, 1]} : vector<23x128xf32> to vector<1x128xf32>
    %340 = vector.broadcast %338 : vector<1x128xf32> to vector<3x128xf32>
    %341 = arith.mulf %340, %336 : vector<3x128xf32>
    %342 = vector.broadcast %339 : vector<1x128xf32> to vector<3x128xf32>
    %343 = arith.mulf %342, %337 : vector<3x128xf32>
    %344 = arith.addf %341, %343 : vector<3x128xf32>
    %345 = vector.extract_strided_slice %335 {offsets = [8, 0], sizes = [1, 128], strides = [1, 1]} : vector<23x128xf32> to vector<1x128xf32>
    %346 = vector.broadcast %345 : vector<1x128xf32> to vector<3x128xf32>
    %347 = arith.mulf %2, %346 : vector<3x128xf32>
    %348 = arith.addf %38, %347 : vector<3x128xf32>
    %349 = vector.extract_strided_slice %335 {offsets = [9, 0], sizes = [1, 128], strides = [1, 1]} : vector<23x128xf32> to vector<1x128xf32>
    %350 = vector.broadcast %349 : vector<1x128xf32> to vector<3x128xf32>
    %351 = arith.mulf %4, %350 : vector<3x128xf32>
    %352 = arith.addf %348, %351 : vector<3x128xf32>
    %353 = vector.extract_strided_slice %335 {offsets = [10, 0], sizes = [1, 128], strides = [1, 1]} : vector<23x128xf32> to vector<1x128xf32>
    %354 = vector.broadcast %353 : vector<1x128xf32> to vector<3x128xf32>
    %355 = arith.mulf %6, %354 : vector<3x128xf32>
    %356 = arith.addf %352, %355 : vector<3x128xf32>
    %357 = vector.extract_strided_slice %335 {offsets = [11, 0], sizes = [1, 128], strides = [1, 1]} : vector<23x128xf32> to vector<1x128xf32>
    %358 = vector.broadcast %357 : vector<1x128xf32> to vector<3x128xf32>
    %359 = arith.mulf %8, %358 : vector<3x128xf32>
    %360 = arith.addf %356, %359 : vector<3x128xf32>
    %361 = vector.extract_strided_slice %335 {offsets = [12, 0], sizes = [1, 128], strides = [1, 1]} : vector<23x128xf32> to vector<1x128xf32>
    %362 = vector.broadcast %361 : vector<1x128xf32> to vector<3x128xf32>
    %363 = arith.mulf %10, %362 : vector<3x128xf32>
    %364 = arith.addf %360, %363 : vector<3x128xf32>
    %365 = vector.extract_strided_slice %335 {offsets = [13, 0], sizes = [1, 128], strides = [1, 1]} : vector<23x128xf32> to vector<1x128xf32>
    %366 = vector.broadcast %365 : vector<1x128xf32> to vector<3x128xf32>
    %367 = arith.mulf %12, %366 : vector<3x128xf32>
    %368 = arith.addf %364, %367 : vector<3x128xf32>
    %369 = vector.extract_strided_slice %335 {offsets = [14, 0], sizes = [1, 128], strides = [1, 1]} : vector<23x128xf32> to vector<1x128xf32>
    %370 = vector.broadcast %369 : vector<1x128xf32> to vector<3x128xf32>
    %371 = arith.mulf %14, %370 : vector<3x128xf32>
    %372 = arith.addf %368, %371 : vector<3x128xf32>
    %373 = vector.extract_strided_slice %335 {offsets = [15, 0], sizes = [1, 128], strides = [1, 1]} : vector<23x128xf32> to vector<1x128xf32>
    %374 = vector.broadcast %373 : vector<1x128xf32> to vector<3x128xf32>
    %375 = arith.mulf %16, %374 : vector<3x128xf32>
    %376 = arith.addf %372, %375 : vector<3x128xf32>
    %377 = vector.extract_strided_slice %335 {offsets = [16, 0], sizes = [1, 128], strides = [1, 1]} : vector<23x128xf32> to vector<1x128xf32>
    %378 = vector.broadcast %377 : vector<1x128xf32> to vector<3x128xf32>
    %379 = arith.mulf %18, %378 : vector<3x128xf32>
    %380 = arith.addf %376, %379 : vector<3x128xf32>
    %381 = vector.extract_strided_slice %335 {offsets = [17, 0], sizes = [1, 128], strides = [1, 1]} : vector<23x128xf32> to vector<1x128xf32>
    %382 = vector.broadcast %381 : vector<1x128xf32> to vector<3x128xf32>
    %383 = arith.mulf %20, %382 : vector<3x128xf32>
    %384 = arith.addf %380, %383 : vector<3x128xf32>
    %385 = vector.extract_strided_slice %335 {offsets = [18, 0], sizes = [1, 128], strides = [1, 1]} : vector<23x128xf32> to vector<1x128xf32>
    %386 = vector.broadcast %385 : vector<1x128xf32> to vector<3x128xf32>
    %387 = arith.mulf %22, %386 : vector<3x128xf32>
    %388 = arith.addf %384, %387 : vector<3x128xf32>
    %389 = vector.extract_strided_slice %335 {offsets = [19, 0], sizes = [1, 128], strides = [1, 1]} : vector<23x128xf32> to vector<1x128xf32>
    %390 = vector.broadcast %389 : vector<1x128xf32> to vector<3x128xf32>
    %391 = arith.mulf %24, %390 : vector<3x128xf32>
    %392 = arith.addf %388, %391 : vector<3x128xf32>
    %393 = vector.extract_strided_slice %335 {offsets = [20, 0], sizes = [1, 128], strides = [1, 1]} : vector<23x128xf32> to vector<1x128xf32>
    %394 = vector.broadcast %393 : vector<1x128xf32> to vector<3x128xf32>
    %395 = arith.mulf %26, %394 : vector<3x128xf32>
    %396 = arith.addf %392, %395 : vector<3x128xf32>
    %397 = vector.extract_strided_slice %335 {offsets = [21, 0], sizes = [1, 128], strides = [1, 1]} : vector<23x128xf32> to vector<1x128xf32>
    %398 = vector.broadcast %397 : vector<1x128xf32> to vector<3x128xf32>
    %399 = arith.mulf %28, %398 : vector<3x128xf32>
    %400 = arith.addf %396, %399 : vector<3x128xf32>
    %401 = vector.extract_strided_slice %335 {offsets = [22, 0], sizes = [1, 128], strides = [1, 1]} : vector<23x128xf32> to vector<1x128xf32>
    %402 = vector.broadcast %401 : vector<1x128xf32> to vector<3x128xf32>
    %403 = arith.mulf %30, %402 : vector<3x128xf32>
    %404 = arith.addf %400, %403 : vector<3x128xf32>
    %405 = vector.extract_strided_slice %344 {offsets = [0, 0], sizes = [1, 128], strides = [1, 1]} : vector<3x128xf32> to vector<1x128xf32>
    %406 = vector.broadcast %405 : vector<1x128xf32> to vector<3x128xf32>
    %407 = arith.mulf %32, %406 : vector<3x128xf32>
    %408 = arith.addf %404, %407 : vector<3x128xf32>
    %409 = vector.extract_strided_slice %344 {offsets = [1, 0], sizes = [1, 128], strides = [1, 1]} : vector<3x128xf32> to vector<1x128xf32>
    %410 = vector.broadcast %409 : vector<1x128xf32> to vector<3x128xf32>
    %411 = arith.mulf %34, %410 : vector<3x128xf32>
    %412 = arith.addf %408, %411 : vector<3x128xf32>
    %413 = vector.extract_strided_slice %344 {offsets = [2, 0], sizes = [1, 128], strides = [1, 1]} : vector<3x128xf32> to vector<1x128xf32>
    %414 = vector.broadcast %413 : vector<1x128xf32> to vector<3x128xf32>
    %415 = arith.mulf %36, %414 : vector<3x128xf32>
    %416 = arith.addf %412, %415 : vector<3x128xf32>
    %417 = arith.subf %337, %416 : vector<3x128xf32>
    %418 = arith.mulf %417, %417 : vector<3x128xf32>
    %cst_53 = arith.constant dense<0.000000e+00> : vector<128xf32>
    %419 = vector.multi_reduction <add>, %418, %cst_53 [0] : vector<3x128xf32> to vector<128xf32>
    %420 = vector.shape_cast %419 : vector<128xf32> to vector<1x128xf32>
    %421 = arith.addi %0, %333 : i32
    %422 = vector.broadcast %421 : i32 to vector<1x128xi32>
    %423 = arith.addi %39, %422 : vector<1x128xi32>
    %c1536_i32_54 = arith.constant 1536 : i32
    %424 = vector.broadcast %c1536_i32_54 : i32 to vector<1x128xi32>
    %425 = arith.cmpi slt, %423, %424 : vector<1x128xi32>
    %cst_55 = arith.constant 0.000000e+00 : f32
    %426 = vector.broadcast %cst_55 : f32 to vector<1x128xf32>
    %427 = arith.select %425, %420, %426 : vector<1x128xi1>, vector<1x128xf32>
    %428 = arith.addf %331, %427 : vector<1x128xf32>
    %c4_i32 = arith.constant 4 : i32
    %c128_i32_56 = arith.constant 128 : i32
    %429 = arith.muli %c4_i32, %c128_i32_56 : i32
    %430 = tpu.assume_multiple %429, 128 : i32
    %c0_57 = arith.constant 0 : index
    %431 = arith.index_cast %430 : i32 to index
    %432 = vector.load %arg1[%c0_57, %431] : memref<23x768xf32, #tpu.memory_space<vmem>>, vector<23x128xf32>
    %433 = vector.extract_strided_slice %432 {offsets = [0, 0], sizes = [3, 128], strides = [1, 1]} : vector<23x128xf32> to vector<3x128xf32>
    %434 = vector.extract_strided_slice %432 {offsets = [3, 0], sizes = [3, 128], strides = [1, 1]} : vector<23x128xf32> to vector<3x128xf32>
    %435 = vector.extract_strided_slice %432 {offsets = [6, 0], sizes = [1, 128], strides = [1, 1]} : vector<23x128xf32> to vector<1x128xf32>
    %436 = vector.extract_strided_slice %432 {offsets = [7, 0], sizes = [1, 128], strides = [1, 1]} : vector<23x128xf32> to vector<1x128xf32>
    %437 = vector.broadcast %435 : vector<1x128xf32> to vector<3x128xf32>
    %438 = arith.mulf %437, %433 : vector<3x128xf32>
    %439 = vector.broadcast %436 : vector<1x128xf32> to vector<3x128xf32>
    %440 = arith.mulf %439, %434 : vector<3x128xf32>
    %441 = arith.addf %438, %440 : vector<3x128xf32>
    %442 = vector.extract_strided_slice %432 {offsets = [8, 0], sizes = [1, 128], strides = [1, 1]} : vector<23x128xf32> to vector<1x128xf32>
    %443 = vector.broadcast %442 : vector<1x128xf32> to vector<3x128xf32>
    %444 = arith.mulf %2, %443 : vector<3x128xf32>
    %445 = arith.addf %38, %444 : vector<3x128xf32>
    %446 = vector.extract_strided_slice %432 {offsets = [9, 0], sizes = [1, 128], strides = [1, 1]} : vector<23x128xf32> to vector<1x128xf32>
    %447 = vector.broadcast %446 : vector<1x128xf32> to vector<3x128xf32>
    %448 = arith.mulf %4, %447 : vector<3x128xf32>
    %449 = arith.addf %445, %448 : vector<3x128xf32>
    %450 = vector.extract_strided_slice %432 {offsets = [10, 0], sizes = [1, 128], strides = [1, 1]} : vector<23x128xf32> to vector<1x128xf32>
    %451 = vector.broadcast %450 : vector<1x128xf32> to vector<3x128xf32>
    %452 = arith.mulf %6, %451 : vector<3x128xf32>
    %453 = arith.addf %449, %452 : vector<3x128xf32>
    %454 = vector.extract_strided_slice %432 {offsets = [11, 0], sizes = [1, 128], strides = [1, 1]} : vector<23x128xf32> to vector<1x128xf32>
    %455 = vector.broadcast %454 : vector<1x128xf32> to vector<3x128xf32>
    %456 = arith.mulf %8, %455 : vector<3x128xf32>
    %457 = arith.addf %453, %456 : vector<3x128xf32>
    %458 = vector.extract_strided_slice %432 {offsets = [12, 0], sizes = [1, 128], strides = [1, 1]} : vector<23x128xf32> to vector<1x128xf32>
    %459 = vector.broadcast %458 : vector<1x128xf32> to vector<3x128xf32>
    %460 = arith.mulf %10, %459 : vector<3x128xf32>
    %461 = arith.addf %457, %460 : vector<3x128xf32>
    %462 = vector.extract_strided_slice %432 {offsets = [13, 0], sizes = [1, 128], strides = [1, 1]} : vector<23x128xf32> to vector<1x128xf32>
    %463 = vector.broadcast %462 : vector<1x128xf32> to vector<3x128xf32>
    %464 = arith.mulf %12, %463 : vector<3x128xf32>
    %465 = arith.addf %461, %464 : vector<3x128xf32>
    %466 = vector.extract_strided_slice %432 {offsets = [14, 0], sizes = [1, 128], strides = [1, 1]} : vector<23x128xf32> to vector<1x128xf32>
    %467 = vector.broadcast %466 : vector<1x128xf32> to vector<3x128xf32>
    %468 = arith.mulf %14, %467 : vector<3x128xf32>
    %469 = arith.addf %465, %468 : vector<3x128xf32>
    %470 = vector.extract_strided_slice %432 {offsets = [15, 0], sizes = [1, 128], strides = [1, 1]} : vector<23x128xf32> to vector<1x128xf32>
    %471 = vector.broadcast %470 : vector<1x128xf32> to vector<3x128xf32>
    %472 = arith.mulf %16, %471 : vector<3x128xf32>
    %473 = arith.addf %469, %472 : vector<3x128xf32>
    %474 = vector.extract_strided_slice %432 {offsets = [16, 0], sizes = [1, 128], strides = [1, 1]} : vector<23x128xf32> to vector<1x128xf32>
    %475 = vector.broadcast %474 : vector<1x128xf32> to vector<3x128xf32>
    %476 = arith.mulf %18, %475 : vector<3x128xf32>
    %477 = arith.addf %473, %476 : vector<3x128xf32>
    %478 = vector.extract_strided_slice %432 {offsets = [17, 0], sizes = [1, 128], strides = [1, 1]} : vector<23x128xf32> to vector<1x128xf32>
    %479 = vector.broadcast %478 : vector<1x128xf32> to vector<3x128xf32>
    %480 = arith.mulf %20, %479 : vector<3x128xf32>
    %481 = arith.addf %477, %480 : vector<3x128xf32>
    %482 = vector.extract_strided_slice %432 {offsets = [18, 0], sizes = [1, 128], strides = [1, 1]} : vector<23x128xf32> to vector<1x128xf32>
    %483 = vector.broadcast %482 : vector<1x128xf32> to vector<3x128xf32>
    %484 = arith.mulf %22, %483 : vector<3x128xf32>
    %485 = arith.addf %481, %484 : vector<3x128xf32>
    %486 = vector.extract_strided_slice %432 {offsets = [19, 0], sizes = [1, 128], strides = [1, 1]} : vector<23x128xf32> to vector<1x128xf32>
    %487 = vector.broadcast %486 : vector<1x128xf32> to vector<3x128xf32>
    %488 = arith.mulf %24, %487 : vector<3x128xf32>
    %489 = arith.addf %485, %488 : vector<3x128xf32>
    %490 = vector.extract_strided_slice %432 {offsets = [20, 0], sizes = [1, 128], strides = [1, 1]} : vector<23x128xf32> to vector<1x128xf32>
    %491 = vector.broadcast %490 : vector<1x128xf32> to vector<3x128xf32>
    %492 = arith.mulf %26, %491 : vector<3x128xf32>
    %493 = arith.addf %489, %492 : vector<3x128xf32>
    %494 = vector.extract_strided_slice %432 {offsets = [21, 0], sizes = [1, 128], strides = [1, 1]} : vector<23x128xf32> to vector<1x128xf32>
    %495 = vector.broadcast %494 : vector<1x128xf32> to vector<3x128xf32>
    %496 = arith.mulf %28, %495 : vector<3x128xf32>
    %497 = arith.addf %493, %496 : vector<3x128xf32>
    %498 = vector.extract_strided_slice %432 {offsets = [22, 0], sizes = [1, 128], strides = [1, 1]} : vector<23x128xf32> to vector<1x128xf32>
    %499 = vector.broadcast %498 : vector<1x128xf32> to vector<3x128xf32>
    %500 = arith.mulf %30, %499 : vector<3x128xf32>
    %501 = arith.addf %497, %500 : vector<3x128xf32>
    %502 = vector.extract_strided_slice %441 {offsets = [0, 0], sizes = [1, 128], strides = [1, 1]} : vector<3x128xf32> to vector<1x128xf32>
    %503 = vector.broadcast %502 : vector<1x128xf32> to vector<3x128xf32>
    %504 = arith.mulf %32, %503 : vector<3x128xf32>
    %505 = arith.addf %501, %504 : vector<3x128xf32>
    %506 = vector.extract_strided_slice %441 {offsets = [1, 0], sizes = [1, 128], strides = [1, 1]} : vector<3x128xf32> to vector<1x128xf32>
    %507 = vector.broadcast %506 : vector<1x128xf32> to vector<3x128xf32>
    %508 = arith.mulf %34, %507 : vector<3x128xf32>
    %509 = arith.addf %505, %508 : vector<3x128xf32>
    %510 = vector.extract_strided_slice %441 {offsets = [2, 0], sizes = [1, 128], strides = [1, 1]} : vector<3x128xf32> to vector<1x128xf32>
    %511 = vector.broadcast %510 : vector<1x128xf32> to vector<3x128xf32>
    %512 = arith.mulf %36, %511 : vector<3x128xf32>
    %513 = arith.addf %509, %512 : vector<3x128xf32>
    %514 = arith.subf %434, %513 : vector<3x128xf32>
    %515 = arith.mulf %514, %514 : vector<3x128xf32>
    %cst_58 = arith.constant dense<0.000000e+00> : vector<128xf32>
    %516 = vector.multi_reduction <add>, %515, %cst_58 [0] : vector<3x128xf32> to vector<128xf32>
    %517 = vector.shape_cast %516 : vector<128xf32> to vector<1x128xf32>
    %518 = arith.addi %0, %430 : i32
    %519 = vector.broadcast %518 : i32 to vector<1x128xi32>
    %520 = arith.addi %39, %519 : vector<1x128xi32>
    %c1536_i32_59 = arith.constant 1536 : i32
    %521 = vector.broadcast %c1536_i32_59 : i32 to vector<1x128xi32>
    %522 = arith.cmpi slt, %520, %521 : vector<1x128xi32>
    %cst_60 = arith.constant 0.000000e+00 : f32
    %523 = vector.broadcast %cst_60 : f32 to vector<1x128xf32>
    %524 = arith.select %522, %517, %523 : vector<1x128xi1>, vector<1x128xf32>
    %525 = arith.addf %428, %524 : vector<1x128xf32>
    %c5_i32 = arith.constant 5 : i32
    %c128_i32_61 = arith.constant 128 : i32
    %526 = arith.muli %c5_i32, %c128_i32_61 : i32
    %527 = tpu.assume_multiple %526, 128 : i32
    %c0_62 = arith.constant 0 : index
    %528 = arith.index_cast %527 : i32 to index
    %529 = vector.load %arg1[%c0_62, %528] : memref<23x768xf32, #tpu.memory_space<vmem>>, vector<23x128xf32>
    %530 = vector.extract_strided_slice %529 {offsets = [0, 0], sizes = [3, 128], strides = [1, 1]} : vector<23x128xf32> to vector<3x128xf32>
    %531 = vector.extract_strided_slice %529 {offsets = [3, 0], sizes = [3, 128], strides = [1, 1]} : vector<23x128xf32> to vector<3x128xf32>
    %532 = vector.extract_strided_slice %529 {offsets = [6, 0], sizes = [1, 128], strides = [1, 1]} : vector<23x128xf32> to vector<1x128xf32>
    %533 = vector.extract_strided_slice %529 {offsets = [7, 0], sizes = [1, 128], strides = [1, 1]} : vector<23x128xf32> to vector<1x128xf32>
    %534 = vector.broadcast %532 : vector<1x128xf32> to vector<3x128xf32>
    %535 = arith.mulf %534, %530 : vector<3x128xf32>
    %536 = vector.broadcast %533 : vector<1x128xf32> to vector<3x128xf32>
    %537 = arith.mulf %536, %531 : vector<3x128xf32>
    %538 = arith.addf %535, %537 : vector<3x128xf32>
    %539 = vector.extract_strided_slice %529 {offsets = [8, 0], sizes = [1, 128], strides = [1, 1]} : vector<23x128xf32> to vector<1x128xf32>
    %540 = vector.broadcast %539 : vector<1x128xf32> to vector<3x128xf32>
    %541 = arith.mulf %2, %540 : vector<3x128xf32>
    %542 = arith.addf %38, %541 : vector<3x128xf32>
    %543 = vector.extract_strided_slice %529 {offsets = [9, 0], sizes = [1, 128], strides = [1, 1]} : vector<23x128xf32> to vector<1x128xf32>
    %544 = vector.broadcast %543 : vector<1x128xf32> to vector<3x128xf32>
    %545 = arith.mulf %4, %544 : vector<3x128xf32>
    %546 = arith.addf %542, %545 : vector<3x128xf32>
    %547 = vector.extract_strided_slice %529 {offsets = [10, 0], sizes = [1, 128], strides = [1, 1]} : vector<23x128xf32> to vector<1x128xf32>
    %548 = vector.broadcast %547 : vector<1x128xf32> to vector<3x128xf32>
    %549 = arith.mulf %6, %548 : vector<3x128xf32>
    %550 = arith.addf %546, %549 : vector<3x128xf32>
    %551 = vector.extract_strided_slice %529 {offsets = [11, 0], sizes = [1, 128], strides = [1, 1]} : vector<23x128xf32> to vector<1x128xf32>
    %552 = vector.broadcast %551 : vector<1x128xf32> to vector<3x128xf32>
    %553 = arith.mulf %8, %552 : vector<3x128xf32>
    %554 = arith.addf %550, %553 : vector<3x128xf32>
    %555 = vector.extract_strided_slice %529 {offsets = [12, 0], sizes = [1, 128], strides = [1, 1]} : vector<23x128xf32> to vector<1x128xf32>
    %556 = vector.broadcast %555 : vector<1x128xf32> to vector<3x128xf32>
    %557 = arith.mulf %10, %556 : vector<3x128xf32>
    %558 = arith.addf %554, %557 : vector<3x128xf32>
    %559 = vector.extract_strided_slice %529 {offsets = [13, 0], sizes = [1, 128], strides = [1, 1]} : vector<23x128xf32> to vector<1x128xf32>
    %560 = vector.broadcast %559 : vector<1x128xf32> to vector<3x128xf32>
    %561 = arith.mulf %12, %560 : vector<3x128xf32>
    %562 = arith.addf %558, %561 : vector<3x128xf32>
    %563 = vector.extract_strided_slice %529 {offsets = [14, 0], sizes = [1, 128], strides = [1, 1]} : vector<23x128xf32> to vector<1x128xf32>
    %564 = vector.broadcast %563 : vector<1x128xf32> to vector<3x128xf32>
    %565 = arith.mulf %14, %564 : vector<3x128xf32>
    %566 = arith.addf %562, %565 : vector<3x128xf32>
    %567 = vector.extract_strided_slice %529 {offsets = [15, 0], sizes = [1, 128], strides = [1, 1]} : vector<23x128xf32> to vector<1x128xf32>
    %568 = vector.broadcast %567 : vector<1x128xf32> to vector<3x128xf32>
    %569 = arith.mulf %16, %568 : vector<3x128xf32>
    %570 = arith.addf %566, %569 : vector<3x128xf32>
    %571 = vector.extract_strided_slice %529 {offsets = [16, 0], sizes = [1, 128], strides = [1, 1]} : vector<23x128xf32> to vector<1x128xf32>
    %572 = vector.broadcast %571 : vector<1x128xf32> to vector<3x128xf32>
    %573 = arith.mulf %18, %572 : vector<3x128xf32>
    %574 = arith.addf %570, %573 : vector<3x128xf32>
    %575 = vector.extract_strided_slice %529 {offsets = [17, 0], sizes = [1, 128], strides = [1, 1]} : vector<23x128xf32> to vector<1x128xf32>
    %576 = vector.broadcast %575 : vector<1x128xf32> to vector<3x128xf32>
    %577 = arith.mulf %20, %576 : vector<3x128xf32>
    %578 = arith.addf %574, %577 : vector<3x128xf32>
    %579 = vector.extract_strided_slice %529 {offsets = [18, 0], sizes = [1, 128], strides = [1, 1]} : vector<23x128xf32> to vector<1x128xf32>
    %580 = vector.broadcast %579 : vector<1x128xf32> to vector<3x128xf32>
    %581 = arith.mulf %22, %580 : vector<3x128xf32>
    %582 = arith.addf %578, %581 : vector<3x128xf32>
    %583 = vector.extract_strided_slice %529 {offsets = [19, 0], sizes = [1, 128], strides = [1, 1]} : vector<23x128xf32> to vector<1x128xf32>
    %584 = vector.broadcast %583 : vector<1x128xf32> to vector<3x128xf32>
    %585 = arith.mulf %24, %584 : vector<3x128xf32>
    %586 = arith.addf %582, %585 : vector<3x128xf32>
    %587 = vector.extract_strided_slice %529 {offsets = [20, 0], sizes = [1, 128], strides = [1, 1]} : vector<23x128xf32> to vector<1x128xf32>
    %588 = vector.broadcast %587 : vector<1x128xf32> to vector<3x128xf32>
    %589 = arith.mulf %26, %588 : vector<3x128xf32>
    %590 = arith.addf %586, %589 : vector<3x128xf32>
    %591 = vector.extract_strided_slice %529 {offsets = [21, 0], sizes = [1, 128], strides = [1, 1]} : vector<23x128xf32> to vector<1x128xf32>
    %592 = vector.broadcast %591 : vector<1x128xf32> to vector<3x128xf32>
    %593 = arith.mulf %28, %592 : vector<3x128xf32>
    %594 = arith.addf %590, %593 : vector<3x128xf32>
    %595 = vector.extract_strided_slice %529 {offsets = [22, 0], sizes = [1, 128], strides = [1, 1]} : vector<23x128xf32> to vector<1x128xf32>
    %596 = vector.broadcast %595 : vector<1x128xf32> to vector<3x128xf32>
    %597 = arith.mulf %30, %596 : vector<3x128xf32>
    %598 = arith.addf %594, %597 : vector<3x128xf32>
    %599 = vector.extract_strided_slice %538 {offsets = [0, 0], sizes = [1, 128], strides = [1, 1]} : vector<3x128xf32> to vector<1x128xf32>
    %600 = vector.broadcast %599 : vector<1x128xf32> to vector<3x128xf32>
    %601 = arith.mulf %32, %600 : vector<3x128xf32>
    %602 = arith.addf %598, %601 : vector<3x128xf32>
    %603 = vector.extract_strided_slice %538 {offsets = [1, 0], sizes = [1, 128], strides = [1, 1]} : vector<3x128xf32> to vector<1x128xf32>
    %604 = vector.broadcast %603 : vector<1x128xf32> to vector<3x128xf32>
    %605 = arith.mulf %34, %604 : vector<3x128xf32>
    %606 = arith.addf %602, %605 : vector<3x128xf32>
    %607 = vector.extract_strided_slice %538 {offsets = [2, 0], sizes = [1, 128], strides = [1, 1]} : vector<3x128xf32> to vector<1x128xf32>
    %608 = vector.broadcast %607 : vector<1x128xf32> to vector<3x128xf32>
    %609 = arith.mulf %36, %608 : vector<3x128xf32>
    %610 = arith.addf %606, %609 : vector<3x128xf32>
    %611 = arith.subf %531, %610 : vector<3x128xf32>
    %612 = arith.mulf %611, %611 : vector<3x128xf32>
    %cst_63 = arith.constant dense<0.000000e+00> : vector<128xf32>
    %613 = vector.multi_reduction <add>, %612, %cst_63 [0] : vector<3x128xf32> to vector<128xf32>
    %614 = vector.shape_cast %613 : vector<128xf32> to vector<1x128xf32>
    %615 = arith.addi %0, %527 : i32
    %616 = vector.broadcast %615 : i32 to vector<1x128xi32>
    %617 = arith.addi %39, %616 : vector<1x128xi32>
    %c1536_i32_64 = arith.constant 1536 : i32
    %618 = vector.broadcast %c1536_i32_64 : i32 to vector<1x128xi32>
    %619 = arith.cmpi slt, %617, %618 : vector<1x128xi32>
    %cst_65 = arith.constant 0.000000e+00 : f32
    %620 = vector.broadcast %cst_65 : f32 to vector<1x128xf32>
    %621 = arith.select %619, %614, %620 : vector<1x128xi1>, vector<1x128xf32>
    %622 = arith.addf %525, %621 : vector<1x128xf32>
    %c6_i32 = arith.constant 6 : i32
    %c0_66 = arith.constant 0 : index
    %c0_67 = arith.constant 0 : index
    %623 = vector.load %arg3[%c0_66, %c0_67] : memref<1x128xf32, #tpu.memory_space<vmem>>, vector<1x128xf32>
    tpu.vector_store %arg3[%c0_66, %c0_67], %622 {strides = array<i32>} : memref<1x128xf32, #tpu.memory_space<vmem>>, vector<1x128xf32>,
    return
  }
  func.func @transform_0(%arg0: i32) -> (i32, i32) {
    %c0_i32 = arith.constant 0 : i32
    %c0_i32_0 = arith.constant 0 : i32
    return %c0_i32, %arg0 : i32, i32
  }
  func.func @transform_1(%arg0: i32) -> (i32, i32, i32) {
    %c0_i32 = arith.constant 0 : i32
    %c0_i32_0 = arith.constant 0 : i32
    %c0_i32_1 = arith.constant 0 : i32
    %c0_i32_2 = arith.constant 0 : i32
    return %c0_i32, %c0_i32_0, %c0_i32_1 : i32, i32, i32
  }
  func.func @transform_2(%arg0: i32) -> (i32, i32) {
    %c0_i32 = arith.constant 0 : i32
    %c0_i32_0 = arith.constant 0 : i32
    return %c0_i32, %arg0 : i32, i32
  }
}

</mosaic_0001>

<bundles_post_ra>
// kernel: tpu_custom_call.1
= control target key start
LH: loop header
LB: loop body
LE: loop exit
PB: predicated region body
PF: predicated region fallthrough
CT: control target
= control target key end

     0   :  { %7 = vsyncpa [#allocation3], 0  ;;  %s2116_s0 = inlined_call_operand.hbm [shape: f32[23,1536], index: 0, kind: input, shape index: {}]   ;;  %s2117_s1 = inlined_call_operand.vmem [shape: f32[19,3,128], index: 1, kind: input, shape index: {}]   ;;  %s2118_s2 = inlined_call_operand.hbm [shape: f32[1,256], index: 2, kind: output, shape index: {}]  }
   0x1   :  { %9 = vsyncpa [#allocation3 + $0x1], 0 }
   0x2   :  { %10 = vsyncpa [#allocation4], 0 }
   0x3   :  { %12 = vsyncpa [#allocation4 + $0x1], 0  ;;  %s1375_s9 = smov 0   ;;  %s1377_s10 = smov 0  }
   0x4   :  { %s1379_s11 = smov 0   ;;  %s1381_s12 = smov 0  }
   0x5 LB: > { %s1396_s13 = sadd.s32 4294967295, %s1353_s12   ;;  %s1164_s14 = sadd.s32 4294967294, %s1353_s12   ;;  %s1353_s12 = sphi %s1381_s12, %s2145_s12   ;;  %s1349_s11 = sphi %s1379_s11, %s2144_s11   ;;  %s1345_s10 = sphi %s1377_s10, %s2143_s10   ;;  %s1341_s9 = sphi %s1375_s9, %s2142_s9  }
   0x6   : > { %s1400_s15 = sadd.s32 1, %s1353_s12   ;;  %s25_s16 = sadd.s32 1, %s1349_s11 }
   0x7   : > { %s22_s17 = ssub.s32 %s1353_s12, %s1400_s15  ;;  %p32_p0 = scmp.ne.s32.totalorder %s1349_s11, %s1345_s10 }
   0x8   : > { %p23_p1 = scmp.eq.s32.totalorder %s22_s17, 0  ;;  %p33_p2 = scmp.eq.s32.totalorder %s1353_s12, 0 }
   0x9   : > { %p38_p3 = scmp.ne.s32.totalorder %s1345_s10, %s1341_s9  ;;  %p39_p4 = scmp.eq.s32.totalorder %s1396_s13, 0 }
   0xa   : > { %s1412_s18 = scalar_select %p23_p1, %s1349_s11, %s25_s16  }
   0xb   : > { %p34_p5 = por %p33_p2, %p32_p0  ;;  %p1414_p6 = por %p39_p4, %p38_p3 }
   0xc   : > { %p83_p7 = scmp.eq.s32.totalorder %s1396_s13, 1  ;;  %p89_p8 = scmp.eq.s32.totalorder %s1164_s14, 1 }
   0xd   : > { %p1220_p10 = scmp.lt.s32.totalorder %s1353_s12, 2  ;;  %s112_s22 = sand.u32 1, %s1349_s11  }
   0xe   : > { %p1421_p11 = por %p83_p7, %p32_p0  ;;  %p1425_p12 = por %p89_p8, %p38_p3 }
   0xf   : > { %s1205_s23 = smul.u32 768, %s1353_s12  ;;  %p1436_p13 = pnand %p1220_p10, %p34_p5 }
  0x10   : > { %s2126_s20 = scalar_select %p1421_p11, 1, 0 }
  0x11   : > { %s2127_s21 = scalar_select %p1425_p12, 1, 0 }
  0x12   : > { %s1206_s24 = smul.u32 144, %s112_s22  ;;  %s1434_s27 = scalar_lea.hbm %s2116_s0, %s1205_s23 }
  0x13   : > { %s1443_s3 = scalar_lea.sflag [#allocation3], %s112_s22  ;;  %s1257_s4 = scalar_lea.hbm %s1434_s27, 2304 }
  0x14   : > { %s116_s29 = scalar_lea.vmem [#allocation2], %s1206_s24  ;;  %p1258_p1 = scmp.ne.s32.totalorder %s1434_s27, %s1257_s4 }
  0x15   : > { %s123_s30 = sshll.u32 %s116_s29, 4  ;;  %p1259_p2 = pneg %p1436_p13  ;;  %s1440_s30 = int_to_ptr.vmem [resolvable:$true] %s123_s30 }
  0x16   : > { %s1262_s7 = scalar_lea.hbm %s2116_s0, 4608  ;;  %p1263_p5 = scmp.lt.u32.totalorder %s1434_s27, %s2116_s0 }
  0x17   : > { %p1260_p3 = pnand %p1259_p2, %p1258_p1  ;;  %p1264_p7 = scmp.lt.u32.totalorder %s1262_s7, %s1257_s4 }
  0x18   : > { %p1266_p10 = scmp.lt.u32.totalorder %s1257_s4, %s1434_s27 }
  0x19   : > { %p1261_p4 = pneg %p1260_p3  ;;  %p1265_p8 = por %p1264_p7, %p1263_p5 }
  0x1b   : > { %p1267_p9 = por %p1266_p10, %p1265_p8 }
  0x1d   : > { %p1268_p0 = pnand %p1267_p9, %p1261_p4 }
  0x1f   : > { %1271 = shalt.err (!%p1268_p0)
}
  0x20   : > { %s1272_s16 = scalar_lea.vmem %s1440_s30, 2304  ;;  %s1355_s17 = smov [#allocation2]  }
  0x21   : > { %p1273_p1 = scmp.ne.s32.totalorder %s1440_s30, %s1272_s16  ;;  %s1277_s22 = sshll.u32 %s1355_s17, 4  ;;  %s1278_s22 = int_to_ptr.vmem [resolvable:$false] %s1277_s22 }
  0x22   : > { %s1279_s23 = scalar_lea.vmem %s1278_s22, 4608  ;;  %p1280_p11 = scmp.lt.s32.totalorder %s1440_s30, %s1278_s22 }
  0x23   : > { %p1275_p3 = pnand %p1273_p1, %p1259_p2  ;;  %p1281_p5 = scmp.lt.s32.totalorder %s1279_s23, %s1272_s16 }
  0x25   : > { %p1276_p12 = pneg %p1275_p3  ;;  %p1282_p7 = por %p1281_p5, %p1280_p11 }
  0x27   : > { %p1283_p8 = pnand %p1282_p7, %p1276_p12 }
  0x29   : > { %1286 = shalt.err (!%p1283_p8)
}
  0x2a   : > { %s1356_s24 = smov 1536   ;;  %s1357_s25 = smov 768  }
  0x2b   : > { %s1358_s26 = smov 48   ;;  %p131_p9 = scmp.lt.s32.totalorder %s1353_s12, 3 }
  0x2c   : > { %1215 = dma.hbm_to_vmem [thread:$0]  (!%p1436_p13), %s1434_s27, 2304, %s1440_s30, %s1443_s3, %s1356_s24, %s1357_s25, %s1358_s26  }
  0x2d   : > { %p2129_p0 = scmp.ge.s32.totalorder %s1353_s12, 1 }
  0x2f   : > { %p132_p2 = pnand %p2129_p0, %p131_p9 }
  0x31   : > { %135 = sbr.rel (%p132_p2) target bundleno = 215 (0xd7), region = 28 }
  0x38   : > { %s1475_s29 = sand.u32 1, %s1345_s10  }
  0x39   : > { %s1207_s4 = smul.u32 144, %s1475_s29  ;;  %s138_s5 = scalar_lea.sflag [#allocation3], %s1475_s29 }
  0x3b   : > { %s1479_s6 = scalar_lea.vmem [#allocation2], %s1207_s4 }
  0x3c   : > { %1332 = dma.done.wait (%p1414_p6), %s138_s5, 2304  }
  0x3d   : > { %1334 = vsyncadd (%p1414_p6), %s138_s5, 4294964992  ;;  %v2120_v0 = vlaneseq  ;;  %v1495_v5 = vld [vmem:[%s2117_s1] sm:$0x7]  ;;  %v1500_v6 = vld [vmem:[%s2117_s1 + $0x4] sm:$0x7]  ;;  %vm335_vm0 = vcmask 1042432  }
  0x3e   : > { %v1503_v7 = vld [vmem:[%s1479_s6 + $0x30] sm:$0xff]  ;;  %v1512_v10 = vld [vmem:[%s2117_s1 + $0x48] sm:$0x7]  ;;  %v1534_v20 = vld [vmem:[%s2117_s1 + $0xc] sm:$0x7]  ;;  %s1202_s17 = sshll.u32 %s1396_s13, 4 }
  0x3f   : > { %v206_v1 = vshrl.u32 %v2120_v0, 7  ;;  %v1521_v13 = vld [vmem:[%s2117_s1 + $0x8] sm:$0x7]  ;;  %v1547_v27 = vld [vmem:[%s2117_s1 + $0x10] sm:$0x7]  ;;  %s160_s22 = scalar_lea.vmem [#allocation5], %s1475_s29  ;;  %s2072_s26 = scalar_lea.hbm %s2118_s2, %s1202_s17 }
  0x40   : > { %v1542_v26 = vld [vmem:[%s1479_s6 + $0x38] sm:$0xff]  ;;  %2130 = vst [vmem:[#allocation8_spill] sm:$0xff] %v1547_v27  ;;  %v1550_v28 = vld [vmem:[%s1479_s6] sm:$0xff]  ;;  %s1098_s23 = sshll.u32 %s160_s22, 4  ;;  %s1086_s4 = scalar_lea.sflag [#allocation4], %s1475_s29  ;;  %s2074_s23 = int_to_ptr.vmem [resolvable:$true] %s1098_s23 }
  0x41   : > { %v1486_v2 = vsub.s32 0, %v206_v1  ;;  %v1488_v3 = vsub.s32 1, %v206_v1  ;;  %v1490_v4 = vsub.s32 2, %v206_v1  ;;  %v1516_v12 = vsub.s32 3, %v206_v1  ;;  %2131 = vst [vmem:[#allocation9_spill] sm:$0xff] %v1550_v28  ;;  %s1287_s5 = scalar_lea.vmem %s2074_s23, 16 }
  0x42   : > { %v1529_v19 = vsub.s32 4, %v206_v1  ;;  %v1539_v25 = vsub.s32 5, %v206_v1  ;;  %v1552_v29 = vsub.s32 6, %v206_v1  ;;  %v1554_v30 = vsub.s32 7, %v206_v1  ;;  %v1568_v37 = vld [vmem:[%s2117_s1 + $0x14] sm:$0x7]  ;;  %p1288_p6 = scmp.ne.s32.totalorder %s2074_s23, %s1287_s5 }
  0x43   : > { %v222_v8 = vrot.slane %v1503_v7, %v1486_v2  ;;  %v228_v9 = vrot.slane %v1503_v7, %v1488_v3  ;;  %v234_v11 = vrot.slane %v1503_v7, %v1490_v4  ;;  %v240_v18 = vrot.slane %v1503_v7, %v1516_v12  ;;  %v1588_v49 = vld [vmem:[%s2117_s1 + $0x18] sm:$0x7]  ;;  %v1595_v54 = vld [vmem:[%s1479_s6 + $0x60] sm:$0x7f]  ;;  %v1605_v59 = vld [vmem:[%s2117_s1 + $0x1c] sm:$0x7] }
  0x44   : > { %v246_v24 = vrot.slane %v1503_v7, %v1529_v19  ;;  %v370_v31 = vrot.slane %v1542_v26, %v1486_v2  ;;  %v376_v32 = vrot.slane %v1542_v26, %v1488_v3  ;;  %v252_v35 = vrot.slane %v1503_v7, %v1539_v25  ;;  %p2139_p11 = scmp.ne.s32.totalorder %s2126_s20, 0 }
  0x45   : > { %v223_v14 = vmul.f32 %v222_v8, %v1495_v5  ;;  %v229_v15 = vmul.f32 %v1500_v6, %v228_v9  ;;  %v235_v17 = vmul.f32 %v1521_v13, %v234_v11  ;;  %v241_v23 = vmul.f32 %v1534_v20, %v240_v18  ;;  %v1613_v9 = vld [vmem:[%s1479_s6 + $0x40] sm:$0xff]  ;;  %v1631_v18 = vld [vmem:[%s1479_s6 + $0x8] sm:$0xff] }
  0x46   : > { %v247_v34 = vmul.f32 %v1547_v27, %v246_v24  ;;  %v382_v36 = vrot.slane %v1542_v26, %v1490_v4  ;;  %v213_v38 = vrot.slane %v1550_v28, %v1554_v30  ;;  %v371_v39 = vmul.f32 %v370_v31, %v1495_v5  ;;  %v1618_v11 = vld [vmem:[%s2117_s1 + $0x20] sm:$0x7]  ;;  %2132 = vst [vmem:[#allocation10_spill] sm:$0xff] %v1631_v18  ;;  %v1637_v31 = vld [vmem:[%s1479_s6 + $0x68] sm:$0x7f]  ;;  %p1289_p12 = pnand %p1288_p6, %p2139_p11 }
  0x47   : > { %v224_v16 = vadd.f32 %v1512_v10, %v223_v14  ;;  %v377_v40 = vmul.f32 %v1500_v6, %v376_v32  ;;  %v388_v41 = vrot.slane %v1542_v26, %v1516_v12  ;;  %v394_v44 = vrot.slane %v1542_v26, %v1529_v19 }
  0x48   : > { %v372_v42 = vadd.f32 %v1512_v10, %v371_v39  ;;  %v383_v43 = vmul.f32 %v1521_v13, %v382_v36  ;;  %v208_v45 = vrot.slane %v1550_v28, %v1552_v29  ;;  %v253_v47 = vmul.f32 %v1568_v37, %v252_v35  ;;  %v1653_v39 = vld [vmem:[%s2117_s1 + $0x28] sm:$0x7]  ;;  %p1290_p13 = pneg %p1289_p12 }
  0x49   : > { %v230_v21 = vadd.f32 %v229_v15, %v224_v16  ;;  %v258_v48 = vrot.slane %v1503_v7, %v1552_v29  ;;  %v214_v50 = vmul.f32 %v213_v38, %v1550_v28  ;;  %v389_v52 = vmul.f32 %v1534_v20, %v388_v41  ;;  %v1627_v16 = vld [vmem:[%s2117_s1 + $0x24] sm:$0x7] }
  0x4a   : > { %v378_v51 = vadd.f32 %v377_v40, %v372_v42  ;;  %v400_v53 = vrot.slane %v1542_v26, %v1539_v25  ;;  %v264_v55 = vrot.slane %v1503_v7, %v1554_v30  ;;  %v395_v57 = vmul.f32 %v1547_v27, %v394_v44  ;;  %v1658_v40 = vld [vmem:[%s2117_s1 + $0x2c] sm:$0x7] }
  0x4b   : > { %v236_v22 = vadd.f32 %v235_v17, %v230_v21  ;;  %v406_v58 = vrot.slane %v1542_v26, %v1552_v29  ;;  %v209_v60 = vmul.f32 %v208_v45, %v1550_v28  ;;  %v259_v62 = vmul.f32 %v1588_v49, %v258_v48 }
  0x4c   : > { %v384_v56 = vadd.f32 %v383_v43, %v378_v51  ;;  %v216_v63 = vrot.slane %v214_v50, 3  ;;  %v270_v1 = vrot.slane %v1595_v54, %v1486_v2  ;;  %v401_v8 = vmul.f32 %v1568_v37, %v400_v53 }
  0x4d   : > { %v242_v33 = vadd.f32 %v241_v23, %v236_v22  ;;  %v276_v14 = vrot.slane %v1595_v54, %v1488_v3  ;;  %v282_v15 = vrot.slane %v1595_v54, %v1490_v4  ;;  %v265_v17 = vmul.f32 %v1605_v59, %v264_v55 }
  0x4e   : > { %v390_v7 = vadd.f32 %v389_v52, %v384_v56  ;;  %v407_v22 = vmul.f32 %v1588_v49, %v406_v58  ;;  %v412_v23 = vrot.slane %v1542_v26, %v1554_v30  ;;  %v517_v32 = vrot.slane %v1613_v9, %v1486_v2 }
  0x4f   : > { %v248_v46 = vadd.f32 %v247_v34, %v242_v33  ;;  %v523_v33 = vrot.slane %v1613_v9, %v1488_v3  ;;  %v529_v34 = vrot.slane %v1613_v9, %v1490_v4  ;;  %v1645_v35 = vadd.f32 %v216_v63, %v209_v60 }
  0x50   : > { %v396_v21 = vadd.f32 %v395_v57, %v390_v7  ;;  %v271_v36 = vmul.f32 %v1618_v11, %v270_v1  ;;  %v288_v38 = vrot.slane %v1595_v54, %v1516_v12  ;;  %v277_v41 = vmul.f32 %v1627_v16, %v276_v14 }
  0x51   : > { %v254_v61 = vadd.f32 %v253_v47, %v248_v46  ;;  %v361_v42 = vrot.slane %v1631_v18, %v1554_v30  ;;  %v518_v43 = vmul.f32 %v517_v32, %v1495_v5  ;;  %v524_v44 = vmul.f32 %v1500_v6, %v523_v33 }
  0x52   : > { %v402_v26 = vadd.f32 %v401_v8, %v396_v21  ;;  %v413_v46 = vmul.f32 %v1605_v59, %v412_v23  ;;  %v418_v47 = vrot.slane %v1637_v31, %v1486_v2  ;;  %v535_v48 = vrot.slane %v1613_v9, %v1516_v12  ;;  %v1697_v23 = vld [vmem:[%s2117_s1 + $0x30] sm:$0x7] }
  0x53   : > { %v260_v24 = vadd.f32 %v259_v62, %v254_v61  ;;  %v519_v51 = vadd.f32 %v1512_v10, %v518_v43  ;;  %v530_v52 = vmul.f32 %v1521_v13, %v529_v34  ;;  %v541_v53 = vrot.slane %v1613_v9, %v1529_v19 }
  0x54   : > { %v408_v45 = vadd.f32 %v407_v22, %v402_v26  ;;  %v283_v55 = vmul.f32 %v1653_v39, %v282_v15  ;;  %v1676_v56 = vmul.f32 %v1658_v40, %v288_v38  ;;  %v294_v57 = vrot.slane %v1595_v54, %v1529_v19  ;;  %v1715_v38 = vld [vmem:[%s2117_s1 + $0x38] sm:$0x7]  ;;  %v1720_v26 = vld [vmem:[%s2117_s1 + $0x3c] sm:$0x7] }
  0x55   : > { %v266_v50 = vadd.f32 %v265_v17, %v260_v24  ;;  %v300_v58 = vrot.slane %v1595_v54, %v1539_v25  ;;  %v356_v60 = vrot.slane %v1631_v18, %v1552_v29  ;;  %v525_v61 = vadd.f32 %v524_v44, %v519_v51  ;;  %v1702_v24 = vld [vmem:[%s2117_s1 + $0x34] sm:$0x7]  ;;  %v1740_v51 = vld [vmem:[%s2117_s1 + $0x44] sm:$0x7] }
  0x56   : > { %v536_v62 = vmul.f32 %v1534_v20, %v535_v48  ;;  %v547_v63 = vrot.slane %v1613_v9, %v1539_v25  ;;  %v362_v1 = vmul.f32 %v1631_v18, %v361_v42  ;;  %v414_v7 = vadd.f32 %v413_v46, %v408_v45  ;;  %v1724_v42 = vld [vmem:[%s1479_s6 + $0x70] sm:$0x7f] }
  0x57   : > { %v419_v8 = vmul.f32 %v1618_v11, %v418_v47  ;;  %v424_v14 = vrot.slane %v1637_v31, %v1488_v3  ;;  %v272_v15 = vadd.f32 %v271_v36, %v266_v50  ;;  %v531_v17 = vadd.f32 %v530_v52, %v525_v61  ;;  %v1732_v45 = vld [vmem:[%s2117_s1 + $0x40] sm:$0x7] }
  0x58   : > { %v542_v21 = vmul.f32 %v1547_v27, %v541_v53  ;;  %v553_v22 = vrot.slane %v1613_v9, %v1552_v29  ;;  %v306_v32 = vrot.slane %v1595_v54, %v1552_v29  ;;  %v312_v33 = vrot.slane %v1645_v35, %v1486_v2 }
  0x59   : > { %v318_v34 = vrot.slane %v1645_v35, %v1488_v3  ;;  %v324_v36 = vrot.slane %v1645_v35, %v1490_v4  ;;  %v357_v54 = vmul.f32 %v1631_v18, %v356_v60  ;;  %v537_v43 = vadd.f32 %v536_v62, %v531_v17  ;;  %v1824_v18 = vld [vmem:[%s1479_s6 + $0x78] sm:$0x7f] }
  0x5a   : > { %v548_v44 = vmul.f32 %v1568_v37, %v547_v63  ;;  %v559_v35 = vrot.slane %v1613_v9, %v1554_v30  ;;  %v364_v46 = vrot.slane %v362_v1, 3  ;;  %v420_v47 = vadd.f32 %v419_v8, %v414_v7  ;;  %v1756_v7 = vld [vmem:[%s1479_s6 + $0x48] sm:$0xff] }
  0x5b   : > { %v425_v48 = vmul.f32 %v1627_v16, %v424_v14  ;;  %v430_v50 = vrot.slane %v1637_v31, %v1490_v4  ;;  %v278_v52 = vadd.f32 %v277_v41, %v272_v15  ;;  %v295_v9 = vmul.f32 %v1697_v23, %v294_v57 }
  0x5c   : > { %v543_v53 = vadd.f32 %v542_v21, %v537_v43  ;;  %v554_v60 = vmul.f32 %v1588_v49, %v553_v22  ;;  %v1745_v61 = vmul.f32 %v1702_v24, %v300_v58  ;;  %v1748_v62 = vmul.f32 %v1715_v38, %v306_v32 }
  0x5d   : > { %v1751_v63 = vmul.f32 %v1720_v26, %v312_v33  ;;  %v565_v1 = vrot.slane %v1724_v42, %v1486_v2  ;;  %v1759_v41 = vmul.f32 %v1732_v45, %v318_v34  ;;  %v436_v57 = vrot.slane %v1637_v31, %v1516_v12  ;;  %v1773_v33 = vld [vmem:[%s1479_s6 + $0x10] sm:$0xff] }
  0x5e   : > { %v549_v8 = vadd.f32 %v548_v44, %v543_v53  ;;  %v560_v58 = vmul.f32 %v1605_v59, %v559_v35  ;;  %v1765_v14 = vmul.f32 %v1740_v51, %v324_v36  ;;  %v1767_v15 = vadd.f32 %v364_v46, %v357_v54 }
  0x5f   : > { %v426_v17 = vadd.f32 %v425_v48, %v420_v47  ;;  %v431_v21 = vmul.f32 %v1653_v39, %v430_v50  ;;  %v284_v22 = vadd.f32 %v283_v55, %v278_v52  ;;  %v442_v32 = vrot.slane %v1637_v31, %v1529_v19 }
  0x60   : > { %2133 = vst [vmem:[#allocation11_spill] sm:$0xff] %v1765_v14  ;;  %v555_v34 = vadd.f32 %v554_v60, %v549_v8  ;;  %v664_v43 = vrot.slane %v1756_v7, %v1486_v2  ;;  %v448_v44 = vrot.slane %v1637_v31, %v1539_v25  ;;  %v566_v36 = vmul.f32 %v1618_v11, %v565_v1 }
  0x61   : > { %v571_v54 = vrot.slane %v1724_v42, %v1488_v3  ;;  %v670_v55 = vrot.slane %v1756_v7, %v1488_v3  ;;  %v437_v35 = vmul.f32 %v1658_v40, %v436_v57  ;;  %v454_v46 = vrot.slane %v1637_v31, %v1552_v29 }
  0x62   : > { %v561_v47 = vadd.f32 %v560_v58, %v555_v34  ;;  %v665_v48 = vmul.f32 %v664_v43, %v1495_v5  ;;  %v432_v50 = vadd.f32 %v431_v21, %v426_v17  ;;  %v508_v52 = vrot.slane %v1773_v33, %v1554_v30 }
  0x63   : > { %v671_v53 = vmul.f32 %v1500_v6, %v670_v55  ;;  %v676_v60 = vrot.slane %v1756_v7, %v1490_v4  ;;  %v290_v1 = vadd.f32 %v1676_v56, %v284_v22  ;;  %v577_v57 = vrot.slane %v1724_v42, %v1490_v4 }
  0x64   : > { %v666_v8 = vadd.f32 %v1512_v10, %v665_v48  ;;  %v682_v31 = vrot.slane %v1756_v7, %v1516_v12  ;;  %v567_v58 = vadd.f32 %v566_v36, %v561_v47  ;;  %v572_v17 = vmul.f32 %v1627_v16, %v571_v54 }
  0x65   : > { %v677_v21 = vmul.f32 %v1521_v13, %v676_v60  ;;  %v688_v34 = vrot.slane %v1756_v7, %v1529_v19  ;;  %v443_v43 = vmul.f32 %v1697_v23, %v442_v32  ;;  %v460_v56 = vrot.slane %v1767_v15, %v1486_v2 }
  0x66   : > { %v672_v22 = vadd.f32 %v671_v53, %v666_v8  ;;  %v683_v55 = vmul.f32 %v1534_v20, %v682_v31  ;;  %v438_v48 = vadd.f32 %v437_v35, %v432_v50  ;;  %v503_v36 = vrot.slane %v1773_v33, %v1552_v29 }
  0x67   : > { %v509_v54 = vmul.f32 %v1773_v33, %v508_v52  ;;  %v694_v47 = vrot.slane %v1756_v7, %v1539_v25  ;;  %v466_v32 = vrot.slane %v1767_v15, %v1488_v3  ;;  %v689_v0 = vmul.f32 %v1547_v27, %v688_v34  ;;  %v1821_v52 = vld [vmem:[%s1479_s6 + $0x18] sm:$0xff] }
  0x68   : > { %v678_v60 = vadd.f32 %v677_v21, %v672_v22  ;;  %v700_v53 = vrot.slane %v1756_v7, %v1552_v29  ;;  %v296_v8 = vadd.f32 %v295_v9, %v290_v1  ;;  %v573_v31 = vadd.f32 %v572_v17, %v567_v58 }
  0x69   : > { %v578_v35 = vmul.f32 %v1653_v39, %v577_v57  ;;  %v583_v50 = vrot.slane %v1724_v42, %v1516_v12  ;;  %v449_v28 = vmul.f32 %v1702_v24, %v448_v44  ;;  %v695_v21 = vmul.f32 %v1568_v37, %v694_v47 }
  0x6a   : > { %v684_v14 = vadd.f32 %v683_v55, %v678_v60  ;;  %v706_v34 = vrot.slane %v1756_v7, %v1554_v30  ;;  %v444_v22 = vadd.f32 %v443_v43, %v438_v48  ;;  %v455_v9 = vmul.f32 %v1715_v38, %v454_v46 }
  0x6b   : > { %v504_v1 = vmul.f32 %v1773_v33, %v503_v36  ;;  %v511_v57 = vrot.slane %v509_v54, 3  ;;  %v655_v58 = vrot.slane %v1821_v52, %v1554_v30  ;;  %v701_v27 = vmul.f32 %v1588_v49, %v700_v53 }
  0x6c   : > { %v690_v17 = vadd.f32 %v689_v0, %v684_v14  ;;  %v712_v44 = vrot.slane %v1824_v18, %v1486_v2  ;;  %v302_v55 = vadd.f32 %v1745_v61, %v296_v8  ;;  %v579_v47 = vadd.f32 %v578_v35, %v573_v31 }
  0x6d   : > { %v584_v7 = vmul.f32 %v1658_v40, %v583_v50  ;;  %v589_v46 = vrot.slane %v1724_v42, %v1529_v19  ;;  %v461_v43 = vmul.f32 %v1720_v26, %v460_v56  ;;  %v707_v36 = vmul.f32 %v1605_v59, %v706_v34 }
  0x6e   : > { %v696_v48 = vadd.f32 %v695_v21, %v690_v17  ;;  %v718_v0 = vrot.slane %v1824_v18, %v1488_v3  ;;  %v450_v14 = vadd.f32 %v449_v28, %v444_v22  ;;  %v472_v54 = vrot.slane %v1767_v15, %v1490_v4  ;;  %v1868_v17 = vld [vmem:[%s1479_s6 + $0x50] sm:$0xff] }
  0x6f   : > { %v1847_v60 = vadd.f32 %v511_v57, %v504_v1  ;;  %v650_v61 = vrot.slane %v1821_v52, %v1552_v29  ;;  %v656_v53 = vmul.f32 %v1821_v52, %v655_v58  ;;  %v713_v56 = vmul.f32 %v1618_v11, %v712_v44 }
  0x70   : > { %v702_v8 = vadd.f32 %v701_v27, %v696_v48  ;;  %v724_v31 = vrot.slane %v1824_v18, %v1490_v4  ;;  %v308_v35 = vadd.f32 %v1748_v62, %v302_v55  ;;  %v585_v28 = vadd.f32 %v584_v7, %v579_v47 }
  0x71   : > { %v590_v50 = vmul.f32 %v1697_v23, %v589_v46  ;;  %v595_v15 = vrot.slane %v1724_v42, %v1539_v25  ;;  %v467_v21 = vmul.f32 %v1732_v45, %v466_v32  ;;  %v719_v22 = vmul.f32 %v1627_v16, %v718_v0 }
  0x72   : > { %v708_v34 = vadd.f32 %v707_v36, %v702_v8  ;;  %v730_v27 = vrot.slane %v1824_v18, %v1516_v12  ;;  %v456_v1 = vadd.f32 %v455_v9, %v450_v14  ;;  %v473_v57 = vmul.f32 %v1740_v51, %v472_v54 }
  0x73   : > { %v601_v62 = vrot.slane %v1724_v42, %v1552_v29  ;;  %v651_v58 = vmul.f32 %v1821_v52, %v650_v61  ;;  %v658_v44 = vrot.slane %v656_v53, 3  ;;  %v725_v32 = vmul.f32 %v1653_v39, %v724_v31 }
  0x74   : > { %v714_v55 = vadd.f32 %v713_v56, %v708_v34  ;;  %v736_v47 = vrot.slane %v1824_v18, %v1529_v19  ;;  %v314_v7 = vadd.f32 %v1751_v63, %v308_v35  ;;  %v591_v46 = vadd.f32 %v590_v50, %v585_v28 }
  0x75   : > { %v596_v9 = vmul.f32 %v1702_v24, %v595_v15  ;;  %v607_v48 = vrot.slane %v1847_v60, %v1486_v2  ;;  %v731_v36 = vmul.f32 %v1658_v40, %v730_v27  ;;  %v742_v0 = vrot.slane %v1824_v18, %v1539_v25 }
  0x76   : > { %v720_v42 = vadd.f32 %v719_v22, %v714_v55  ;;  %v811_v14 = vrot.slane %v1868_v17, %v1486_v2  ;;  %v462_v54 = vadd.f32 %v461_v43, %v456_v1  ;;  %v602_v61 = vmul.f32 %v1715_v38, %v601_v62 }
  0x77   : > { %v817_v63 = vrot.slane %v1868_v17, %v1488_v3  ;;  %v823_v53 = vrot.slane %v1868_v17, %v1490_v4  ;;  %v1887_v8 = vadd.f32 %v658_v44, %v651_v58  ;;  %v737_v31 = vmul.f32 %v1697_v23, %v736_v47 }
  0x78   : > { %v726_v56 = vadd.f32 %v725_v32, %v720_v42  ;;  %v812_v35 = vmul.f32 %v811_v14, %v1495_v5  ;;  %v597_v28 = vadd.f32 %v596_v9, %v591_v46  ;;  %v748_v43 = vrot.slane %v1824_v18, %v1552_v29  ;;  %v1905_v32 = vld [vmem:[%s1479_s6 + $0x20] sm:$0xff] }
  0x79   : > { %v818_v50 = vmul.f32 %v1500_v6, %v817_v63  ;;  %v829_v15 = vrot.slane %v1868_v17, %v1516_v12  ;;  %v743_v22 = vmul.f32 %v1702_v24, %v742_v0  ;;  %v824_v1 = vmul.f32 %v1521_v13, %v823_v53  ;;  %v2134_v14 = vld [vmem:[#allocation8_spill] sm:$0xff]  ;;  %v2135_v53 = vld [vmem:[#allocation11_spill] sm:$0xff] }
  0x7a   : > { %v732_v34 = vadd.f32 %v731_v36, %v726_v56  ;;  %v813_v27 = vadd.f32 %v1512_v10, %v812_v35  ;;  %v320_v62 = vadd.f32 %v1759_v41, %v314_v7  ;;  %v468_v58 = vadd.f32 %v467_v21, %v462_v54 }
  0x7b   : > { %v613_v44 = vrot.slane %v1847_v60, %v1488_v3  ;;  %v835_v18 = vrot.slane %v1868_v17, %v1529_v19  ;;  %v830_v46 = vmul.f32 %v1534_v20, %v829_v15  ;;  %v841_v9 = vrot.slane %v1868_v17, %v1539_v25 }
  0x7c   : > { %v738_v55 = vadd.f32 %v737_v31, %v732_v34  ;;  %v819_v47 = vadd.f32 %v818_v50, %v813_v27  ;;  %v603_v42 = vadd.f32 %v602_v61, %v597_v28  ;;  %v608_v41 = vmul.f32 %v1720_v26, %v607_v48  ;;  %v1922_v48 = vld [vmem:[%s1479_s6 + $0x80] sm:$0x7f] }
  0x7d   : > { %v749_v21 = vmul.f32 %v1715_v38, %v748_v43  ;;  %v754_v7 = vrot.slane %v1887_v8, %v1486_v2  ;;  %v836_v54 = vmul.f32 %v2134_v14, %v835_v18  ;;  %v847_v63 = vrot.slane %v1868_v17, %v1552_v29 }
  0x7e   : > { %v744_v36 = vadd.f32 %v743_v22, %v738_v55  ;;  %v825_v0 = vadd.f32 %v824_v1, %v819_v47  ;;  %v326_v56 = vadd.f32 %v2135_v53, %v320_v62  ;;  %v614_v31 = vmul.f32 %v1732_v45, %v613_v44 }
  0x7f   : > { %v619_v61 = vrot.slane %v1847_v60, %v1490_v4  ;;  %v802_v35 = vrot.slane %v1905_v32, %v1554_v30  ;;  %v474_v28 = vadd.f32 %v473_v57, %v468_v58  ;;  %v842_v50 = vmul.f32 %v1568_v37, %v841_v9 }
  0x80   : > { %v831_v43 = vadd.f32 %v830_v46, %v825_v0  ;;  %v853_v15 = vrot.slane %v1868_v17, %v1554_v30  ;;  %v609_v34 = vadd.f32 %v608_v41, %v603_v42  ;;  %v750_v22 = vadd.f32 %v749_v21, %v744_v36 }
  0x81   : > { %v755_v27 = vmul.f32 %v1720_v26, %v754_v7  ;;  %v760_v1 = vrot.slane %v1887_v8, %v1488_v3  ;;  %v848_v62 = vmul.f32 %v1588_v49, %v847_v63  ;;  %v859_v44 = vrot.slane %v1922_v48, %v1486_v2 }
  0x82   : > { %v837_v60 = vadd.f32 %v836_v54, %v831_v43  ;;  %v328_v57 = vrot.slane %v326_v56, 5  ;;  %v620_v58 = vmul.f32 %v1740_v51, %v619_v61  ;;  %v797_v18 = vrot.slane %v1905_v32, %v1552_v29  ;;  %v1952_v61 = vld [vmem:[%s1479_s6 + $0x58] sm:$0xff] }
  0x83   : > { %v803_v17 = vmul.f32 %v1905_v32, %v802_v35  ;;  %v476_v55 = vrot.slane %v474_v28, 5  ;;  %v854_v46 = vmul.f32 %v1605_v59, %v853_v15  ;;  %v865_v9 = vrot.slane %v1922_v48, %v1488_v3  ;;  %v2137_v28 = vld [vmem:[#allocation10_spill] sm:$0xff] }
  0x84   : > { %v843_v47 = vadd.f32 %v842_v50, %v837_v60  ;;  %v615_v42 = vadd.f32 %v614_v31, %v609_v34  ;;  %v756_v41 = vadd.f32 %v755_v27, %v750_v22  ;;  %v761_v21 = vmul.f32 %v1732_v45, %v760_v1  ;;  %v2136_v31 = vld [vmem:[#allocation9_spill] sm:$0xff] }
  0x85   : > { %v766_v7 = vrot.slane %v1887_v8, %v1490_v4  ;;  %v860_v0 = vmul.f32 %v1618_v11, %v859_v44  ;;  %v871_v54 = vrot.slane %v1922_v48, %v1490_v4  ;;  %v798_v63 = vmul.f32 %v1905_v32, %v797_v18 }
  0x86   : > { %v849_v36 = vadd.f32 %v848_v62, %v843_v47  ;;  %v805_v53 = vrot.slane %v803_v17, 3  ;;  %v877_v56 = vrot.slane %v1922_v48, %v1516_v12  ;;  %v330_v35 = vsub.f32 %v2136_v31, %v328_v57 }
  0x87   : > { %v478_v43 = vsub.f32 %v2137_v28, %v476_v55  ;;  %v866_v8 = vmul.f32 %v1627_v16, %v865_v9  ;;  %v621_v15 = vadd.f32 %v620_v58, %v615_v42  ;;  %v762_v34 = vadd.f32 %v761_v21, %v756_v41 }
  0x88   : > { %v855_v50 = vadd.f32 %v854_v46, %v849_v36  ;;  %v767_v22 = vmul.f32 %v1740_v51, %v766_v7  ;;  %v883_v27 = vrot.slane %v1922_v48, %v1529_v19  ;;  %v872_v60 = vmul.f32 %v1653_v39, %v871_v54 }
  0x89   : > { %v958_v62 = vrot.slane %v1952_v61, %v1486_v2  ;;  %v964_v44 = vrot.slane %v1952_v61, %v1488_v3  ;;  %v807_v57 = vadd.f32 %v805_v53, %v798_v63  ;;  %v878_v18 = vmul.f32 %v1658_v40, %v877_v56 }
  0x8a   : > { %v861_v1 = vadd.f32 %v860_v0, %v855_v50  ;;  %v889_v58 = vrot.slane %v1922_v48, %v1539_v25  ;;  %v970_v17 = vrot.slane %v1952_v61, %v1490_v4  ;;  %v976_v9 = vrot.slane %v1952_v61, %v1516_v12 }
  0x8b   : > { %v959_v47 = vmul.f32 %v958_v62, %v1495_v5  ;;  %v965_v46 = vmul.f32 %v1500_v6, %v964_v44  ;;  %v331_v42 = vmul.f32 %v330_v35, %v330_v35  ;;  %v623_v41 = vrot.slane %v621_v15, 5  ;;  %v1984_v35 = vld [vmem:[%s1479_s6 + $0x28] sm:$0xff] }
  0x8c   : > { %v867_v55 = vadd.f32 %v866_v8, %v861_v1  ;;  %v768_v21 = vadd.f32 %v767_v22, %v762_v34  ;;  %v895_v7 = vrot.slane %v1922_v48, %v1552_v29  ;;  %v884_v0 = vmul.f32 %v1697_v23, %v883_v27  ;;  %v1998_v62 = vld [vmem:[%s1479_s6 + $0x88] sm:$0x7f]  ;;  %s2039_s6 = smul.u32 768, %s1396_s13  ;;  %s1359_s13 = smov [#allocation5]  }
  0x8d   : > { %v960_v54 = vadd.f32 %v1512_v10, %v959_v47  ;;  %v971_v63 = vmul.f32 %v1521_v13, %v970_v17  ;;  %v479_v5 = vmul.f32 %v478_v43, %v478_v43  ;;  %v890_v53 = vmul.f32 %v1702_v24, %v889_v58  ;;  %s1291_s27 = sshll.u32 %s1359_s13, 4  ;;  %s1292_s27 = int_to_ptr.vmem [resolvable:$false] %s1291_s27 }
  0x8e   : > { %v873_v36 = vadd.f32 %v872_v60, %v867_v55  ;;  %v901_v6 = vrot.slane %v807_v57, %v1486_v2  ;;  %v982_v56 = vrot.slane %v1952_v61, %v1529_v19  ;;  %v977_v28 = vmul.f32 %v1534_v20, %v976_v9  ;;  %s490_s19 = sadd.s32 128, %s2039_s6  ;;  %s637_s7 = sadd.s32 256, %s2039_s6 }
  0x8f   : > { %v966_v48 = vadd.f32 %v965_v46, %v960_v54  ;;  %v988_v10 = vrot.slane %v1952_v61, %v1539_v25  ;;  %v625_v13 = vsub.f32 %v1773_v33, %v623_v41  ;;  %v770_v43 = vrot.slane %v768_v21, 5  ;;  %s784_s8 = sadd.s32 384, %s2039_s6  ;;  %s931_s14 = sadd.s32 512, %s2039_s6 }
  0x90   : > { %v879_v31 = vadd.f32 %v878_v18, %v873_v36  ;;  %v896_v50 = vmul.f32 %v1715_v38, %v895_v7  ;;  %v907_v8 = vrot.slane %v807_v57, %v1488_v3  ;;  %v983_v22 = vmul.f32 %v2134_v14, %v982_v56  ;;  %s1078_s16 = sadd.s32 640, %s2039_s6  ;;  %s1293_s28 = scalar_lea.vmem %s1292_s27, 32 }
  0x91   : > { %v972_v34 = vadd.f32 %v971_v63, %v966_v48  ;;  %v994_v27 = vrot.slane %v1952_v61, %v1552_v29  ;;  %v333_v1 = vrot.slane %v331_v42, 3  ;;  %v902_v20 = vmul.f32 %v1720_v26, %v901_v6  ;;  %p1294_p4 = scmp.lt.s32.totalorder %s2074_s23, %s1292_s27  ;;  %p1295_p10 = scmp.lt.s32.totalorder %s1293_s28, %s1287_s5 }
  0x92   : > { %v885_v15 = vadd.f32 %v884_v0, %v879_v31  ;;  %v913_v60 = vrot.slane %v807_v57, %v1490_v4  ;;  %v949_v33 = vrot.slane %v1984_v35, %v1554_v30  ;;  %v989_v58 = vmul.f32 %v1568_v37, %v988_v10 }
  0x93   : > { %v978_v18 = vadd.f32 %v977_v28, %v972_v34  ;;  %v1000_v14 = vrot.slane %v1952_v61, %v1554_v30  ;;  %v481_v17 = vrot.slane %v479_v5, 3  ;;  %v626_v55 = vmul.f32 %v625_v13, %v625_v13  ;;  %p1296_p1 = por %p1295_p10, %p1294_p4 }
  0x94   : > { %v891_v44 = vadd.f32 %v890_v53, %v885_v15  ;;  %v772_v47 = vsub.f32 %v1821_v52, %v770_v43  ;;  %v908_v46 = vmul.f32 %v1732_v45, %v907_v8  ;;  %v995_v42 = vmul.f32 %v1588_v49, %v994_v27 }
  0x95   : > { %v984_v57 = vadd.f32 %v983_v22, %v978_v18  ;;  %v1006_v41 = vrot.slane %v1998_v62, %v1486_v2  ;;  %v336_v21 = vsel %vm335_vm0, %v333_v1, 0.0  ;;  %v914_v37 = vmul.f32 %v1740_v51, %v913_v60  ;;  %p1297_p3 = pnand %p1296_p1, %p1290_p13 }
  0x96   : > { %v897_v9 = vadd.f32 %v896_v50, %v891_v44  ;;  %v944_v30 = vrot.slane %v1984_v35, %v1552_v29  ;;  %v950_v61 = vmul.f32 %v1984_v35, %v949_v33  ;;  %v1001_v36 = vmul.f32 %v1605_v59, %v1000_v14 }
  0x97   : > { %v990_v52 = vadd.f32 %v989_v58, %v984_v57  ;;  %v1012_v0 = vrot.slane %v1998_v62, %v1488_v3  ;;  %v483_v49 = vsel %vm335_vm0, %v481_v17, 0.0  ;;  %v628_v54 = vrot.slane %v626_v55, 3 }
  0x98   : > { %v903_v7 = vadd.f32 %v902_v20, %v897_v9  ;;  %v773_v63 = vmul.f32 %v772_v47, %v772_v47  ;;  %v1007_v6 = vmul.f32 %v1618_v11, %v1006_v41  ;;  %v1018_v56 = vrot.slane %v1998_v62, %v1490_v4 }
  0x99   : > { %v996_v53 = vadd.f32 %v995_v42, %v990_v52  ;;  %v337_v31 = vrot.slane %v336_v21, 4  ;;  %v945_v48 = vmul.f32 %v1984_v35, %v944_v30  ;;  %v952_v28 = vrot.slane %v950_v61, 3 }
  0x9a   : > { %v909_v5 = vadd.f32 %v908_v46, %v903_v7  ;;  %v1013_v13 = vmul.f32 %v1627_v16, %v1012_v0  ;;  %v1024_v43 = vrot.slane %v1998_v62, %v1516_v12  ;;  %v484_v50 = vrot.slane %v483_v49, 4 }
  0x9b   : > { %v1002_v59 = vadd.f32 %v1001_v36, %v996_v53  ;;  %v630_v8 = vsel %vm335_vm0, %v628_v54, 0.0  ;;  %v775_v15 = vrot.slane %v773_v63, 3  ;;  %v1019_v22 = vmul.f32 %v1653_v39, %v1018_v56 }
  0x9c   : > { %v915_v10 = vadd.f32 %v914_v37, %v909_v5  ;;  %v1030_v27 = vrot.slane %v1998_v62, %v1529_v19  ;;  %v338_v1 = vadd.f32 %v337_v31, %v336_v21  ;;  %v954_v20 = vadd.f32 %v952_v28, %v945_v48 }
  0x9d   : > { %v1008_v11 = vadd.f32 %v1007_v6, %v1002_v59  ;;  %v1025_v33 = vmul.f32 %v1658_v40, %v1024_v43  ;;  %v1036_v12 = vrot.slane %v1998_v62, %v1539_v25  ;;  %v485_v44 = vadd.f32 %v484_v50, %v483_v49 }
  0x9e   : > { %v917_v34 = vrot.slane %v915_v10, 5  ;;  %v631_v18 = vrot.slane %v630_v8, 4  ;;  %v777_v58 = vsel %vm335_vm0, %v775_v15, 0.0  ;;  %v1031_v39 = vmul.f32 %v1697_v23, %v1030_v27 }
  0x9f   : > { %v1014_v16 = vadd.f32 %v1013_v13, %v1008_v11  ;;  %v1042_v19 = vrot.slane %v1998_v62, %v1552_v29  ;;  %v1037_v25 = vmul.f32 %v1702_v24, %v1036_v12  ;;  %v1048_v47 = vrot.slane %v954_v20, %v1486_v2 }
  0xa0   : > { %v919_v60 = vsub.f32 %v1905_v32, %v917_v34  ;;  %v339_v32 = vrot.slane %v338_v1, 2  ;;  %v486_v46 = vrot.slane %v485_v44, 2  ;;  %v632_v9 = vadd.f32 %v631_v18, %v630_v8 }
  0xa1   : > { %v1020_v17 = vadd.f32 %v1019_v22, %v1014_v16  ;;  %v778_v57 = vrot.slane %v777_v58, 4  ;;  %v1043_v41 = vmul.f32 %v1715_v38, %v1042_v19  ;;  %v1054_v29 = vrot.slane %v954_v20, %v1488_v3 }
  0xa2   : > { %v920_v14 = vmul.f32 %v919_v60, %v919_v60  ;;  %v2138_v62 = vlaneseq  ;;  %v344_v37 = vstv %s2039_s6  ;;  %v340_v30 = vadd.f32 %v339_v32, %v338_v1 }
  0xa3   : > { %v1026_v55 = vadd.f32 %v1025_v33, %v1020_v17  ;;  %v1049_v2 = vmul.f32 %v1720_v26, %v1048_v47  ;;  %v1060_v61 = vrot.slane %v954_v20, %v1490_v4  ;;  %v487_v7 = vadd.f32 %v486_v46, %v485_v44 }
  0xa4   : > { %v922_v40 = vrot.slane %v920_v14, 3  ;;  %v2047_v21 = vand.u32 127, %v2138_v62  ;;  %v633_v52 = vrot.slane %v632_v9, 2  ;;  %v779_v36 = vadd.f32 %v778_v57, %v777_v58 }
  0xa5   : > { %v1032_v23 = vadd.f32 %v1031_v39, %v1026_v55  ;;  %v1055_v38 = vmul.f32 %v1732_v45, %v1054_v29  ;;  %v491_v3 = vstv %s490_s19  ;;  %v341_v54 = vrot.slane %v340_v30, 1 }
  0xa6   : > { %v924_v42 = vsel %vm335_vm0, %v922_v40, 0.0  ;;  %v345_v63 = vadd.s32 %v344_v37, %v2047_v21  ;;  %v1061_v53 = vmul.f32 %v1740_v51, %v1060_v61  ;;  %v488_v6 = vrot.slane %v487_v7, 1 }
  0xa7   : > { %v1038_v24 = vadd.f32 %v1037_v25, %v1032_v23  ;;  %v925_v0 = vrot.slane %v924_v42, 4  ;;  %v634_v26 = vadd.f32 %v633_v52, %v632_v9  ;;  %v780_v56 = vrot.slane %v779_v36, 2 }
  0xa8   : > { %v492_v31 = vadd.s32 %v491_v3, %v2047_v21  ;;  %v638_v28 = vstv %s637_s7  ;;  %v342_v10 = vadd.f32 %v341_v54, %v340_v30  ;;  %vm346_vm1 = vcmp.lt.s32.totalorder %v345_v63, 1536 }
  0xa9   : > { %v1044_v49 = vadd.f32 %v1043_v41, %v1038_v24  ;;  %v926_v4 = vadd.f32 %v925_v0, %v924_v42  ;;  %v489_v59 = vadd.f32 %v488_v6, %v487_v7  ;;  %v635_v13 = vrot.slane %v634_v26, 1 }
  0xaa   : > { %v781_v43 = vadd.f32 %v780_v56, %v779_v36  ;;  %vm493_vm2 = vcmp.lt.s32.totalorder %v492_v31, 1536  ;;  %v639_v51 = vadd.s32 %v638_v28, %v2047_v21  ;;  %v785_v15 = vstv %s784_s8 }
  0xab   : > { %v1050_v5 = vadd.f32 %v1049_v2, %v1044_v49  ;;  %v927_v50 = vrot.slane %v926_v4, 2  ;;  %v347_v34 = vsel %vm346_vm1, %v342_v10, 0.0  ;;  %v494_v22 = vsel %vm493_vm2, %v489_v59, 0.0 }
  0xac   : > { %v636_v27 = vadd.f32 %v635_v13, %v634_v26  ;;  %v782_v1 = vrot.slane %v781_v43, 1  ;;  %vm640_vm3 = vcmp.lt.s32.totalorder %v639_v51, 1536  ;;  %v786_v60 = vadd.s32 %v785_v15, %v2047_v21 }
  0xad   : > { %v1056_v48 = vadd.f32 %v1055_v38, %v1050_v5  ;;  %v928_v20 = vadd.f32 %v927_v50, %v926_v4  ;;  %v932_v33 = vstv %s931_s14  ;;  %v495_v12 = vadd.f32 %v494_v22, %v347_v34 }
  0xae   : > { %v641_v18 = vsel %vm640_vm3, %v636_v27, 0.0  ;;  %v783_v58 = vadd.f32 %v782_v1, %v781_v43  ;;  %vm787_vm4 = vcmp.lt.s32.totalorder %v786_v60, 1536  ;;  %v933_v17 = vadd.s32 %v932_v33, %v2047_v21 }
  0xaf   : > { %v1062_v45 = vadd.f32 %v1061_v53, %v1056_v48  ;;  %v929_v14 = vrot.slane %v928_v20, 1  ;;  %v642_v19 = vadd.f32 %v641_v18, %v495_v12  ;;  %v1079_v25 = vstv %s1078_s16 }
  0xb0   : > { %v788_v32 = vsel %vm787_vm4, %v783_v58, 0.0  ;;  %vm934_vm5 = vcmp.lt.s32.totalorder %v933_v17, 1536  ;;  %v1080_v9 = vadd.s32 %v1079_v25, %v2047_v21 }
  0xb1   : > { %v1064_v8 = vrot.slane %v1062_v45, 5  ;;  %v930_v40 = vadd.f32 %v929_v14, %v928_v20  ;;  %v789_v46 = vadd.f32 %v788_v32, %v642_v19 }
  0xb2   : > { %vm1081_vm6 = vcmp.lt.s32.totalorder %v1080_v9, 1536 }
  0xb3   : > { %v1066_v11 = vsub.f32 %v1984_v35, %v1064_v8  ;;  %v935_v57 = vsel %vm934_vm5, %v930_v40, 0.0 }
  0xb4   : > { %v936_v41 = vadd.f32 %v935_v57, %v789_v46 }
  0xb5   : > { %v1067_v16 = vmul.f32 %v1066_v11, %v1066_v11 }
  0xb7   : > { %v1069_v44 = vrot.slane %v1067_v16, 3 }
  0xb9   : > { %v1071_v35 = vsel %vm335_vm0, %v1069_v44, 0.0 }
  0xba   : > { %v1072_v39 = vrot.slane %v1071_v35, 4 }
  0xbc   : > { %v1073_v55 = vadd.f32 %v1072_v39, %v1071_v35 }
  0xbe   : > { %v1074_v47 = vrot.slane %v1073_v55, 2 }
  0xc0   : > { %v1075_v42 = vadd.f32 %v1074_v47, %v1073_v55 }
  0xc2   : > { %v1076_v23 = vrot.slane %v1075_v42, 1 }
  0xc4   : > { %v1077_v29 = vadd.f32 %v1076_v23, %v1075_v42 }
  0xc6   : > { %v1082_v62 = vsel %vm1081_vm6, %v1077_v29, 0.0 }
  0xc7   : > { %v1083_v37 = vadd.f32 %v1082_v62, %v936_v41 }
  0xc9   : > { %1084 = vst [vmem:[%s160_s22] sm:$0x1] %v1083_v37 }
  0xca   : > { %1300 = shalt.err (!%p1297_p3)
}
  0xcb   : > { %s1301_s29 = scalar_lea.hbm %s2072_s26, 16  ;;  %s1305_s6 = scalar_lea.hbm %s2118_s2, 32 }
  0xcc   : > { %p1302_p5 = scmp.ne.s32.totalorder %s2072_s26, %s1301_s29  ;;  %p1306_p9 = scmp.lt.u32.totalorder %s2072_s26, %s2118_s2 }
  0xcd   : > { %p1307_p0 = scmp.lt.u32.totalorder %s1305_s6, %s1301_s29  ;;  %p1309_p6 = scmp.lt.u32.totalorder %s1301_s29, %s2072_s26 }
  0xce   : > { %p1303_p7 = pnand %p1302_p5, %p2139_p11 }
  0xcf   : > { %p1308_p2 = por %p1307_p0, %p1306_p9 }
  0xd0   : > { %p1304_p8 = pneg %p1303_p7 }
  0xd1   : > { %p1310_p12 = por %p1309_p6, %p1308_p2 }
  0xd3   : > { %p1311_p13 = pnand %p1310_p12, %p1304_p8 }
  0xd5   : > { %1314 = shalt.err (!%p1311_p13)
}
  0xd6   : > { %1210 = dma.vmem_to_hbm [thread:$0]  (%p2139_p11), %s2074_s23, 16, %s2072_s26, %s1086_s4  }
  0xd7 PF: > { %s1110_s8 = sand.u32 1, %s1341_s9   ;;  %p2140_p4 = scmp.ne.s32.totalorder %s2127_s21, 0 }
  0xd8   : > { %p2141_p10 = scmp.ge.s32.totalorder %s1353_s12, 2  ;;  %s1111_s14 = scalar_lea.sflag [#allocation4], %s1110_s8 }
  0xda   : > { %p1217_p1 = pnand %p2141_p10, %p2140_p4 }
  0xdc   : > { %1336 = dma.done.wait (!%p1217_p1), %s1111_s14, 16  }
  0xdd   : > { %1338 = vsyncadd (!%p1217_p1), %s1111_s14, 4294967280  ;;  %p15_p3 = scmp.ge.s32.totalorder %s1400_s15, 4   ;;  %s2142_s9 = smov %s1345_s10 }
  0xde   : > { %s2143_s10 = smov %s1349_s11  ;;  %s2144_s11 = smov %s1412_s18 }
  0xdf   : > { %s2145_s12 = smov %s1400_s15  ;;  %17 = sbr.rel (!%p15_p3) target bundleno = 5 (0x5), region = 96 }
  0xe6   :  { %1115 = vsyncpa [#allocation3], 1 }
  0xe7   :  { %1117 = vsyncpa [#allocation3 + $0x1], 1 }
  0xe8   :  { %1118 = vsyncpa [#allocation4], 1 }
  0xe9   :  { %1120 = vsyncpa [#allocation4 + $0x1], 1 }

</bundles_post_ra>
